<compile_context>
chip_gen: v7x
topology: tpu7x:2x2x1
jax: 0.10.0
libtpu: 0.0.40
codegen_flags: <defaults>
</compile_context>

<pallas_src>
import jax
import jax.numpy as jnp
from jax.experimental import pallas as pl
from jax.experimental.pallas import tpu as pltpu

# ---- TPU-friendly stand-ins for the 300-d GloVe model ----
VOCAB = 128    # embedding vocab (synthetic stand-in for glove.npy rows)
D = 128        # input_size  (300 in the original)
H = 128        # hidden_size (300 in the original)
C = 8          # class_num (real classes)
C_PAD = 128    # lane-dense logits width (extra columns have zero weights)
B = 256        # batch
S = 16         # sequence length


def _num_batch_tiles():
    """2 parallel tiles on dual-TC v7x, 1 tile on single-TC v5e/v6e."""
    try:
        kind = jax.devices()[0].device_kind.lower().replace(" ", "")
    except Exception:
        kind = ""
    return 2 if ("v7" in kind or "tpu7" in kind) else 1


def dan_kernel(counts_ref, w_in_ref, b1_ref, w2_ref, b2_ref,
               w3_ref, b3_ref, w4_ref, b4_ref, labels_ref, out_ref):
    # Fused embedding lookup + sequence mean + first Linear:
    #   relu((counts @ emb) @ w1 + b1) == relu(counts @ (emb @ w1) + b1)
    h = jnp.maximum(
        jnp.dot(counts_ref[...], w_in_ref[...],
                preferred_element_type=jnp.float32) + b1_ref[...], 0.0)
    h = jnp.maximum(
        jnp.dot(h.astype(jnp.bfloat16), w2_ref[...],
                preferred_element_type=jnp.float32) + b2_ref[...], 0.0)
    h = jnp.maximum(
        jnp.dot(h.astype(jnp.bfloat16), w3_ref[...],
                preferred_element_type=jnp.float32) + b3_ref[...], 0.0)
    logits = (jnp.dot(h.astype(jnp.bfloat16), w4_ref[...],
                      preferred_element_type=jnp.float32)
              + b4_ref[...])                                       # (BT, C_PAD)

    # --- per-row cross-entropy (pad lanes excluded from max / logsumexp) ---
    col = jax.lax.broadcasted_iota(jnp.int32, logits.shape, 1)     # (BT, C_PAD)
    masked = jnp.where(col < C, logits, jnp.float32(-1e30))
    m = jnp.max(masked, axis=-1, keepdims=True)                    # (BT, 1)
    lse = m + jnp.log(jnp.sum(jnp.exp(masked - m), axis=-1, keepdims=True))
    picked = jnp.sum(jnp.where(col == labels_ref[...], logits, 0.0),
                     axis=-1, keepdims=True)                       # (BT, 1)
    nll = lse - picked                                             # (BT, 1)

    # NLL rides in the last (zero-weight) pad lane -> one unmasked,
    # lane-dense 128-wide store for the whole kernel output.
    out_ref[...] = jnp.where(col == C_PAD - 1, nll, logits)


def prepare_params(params):
    """One-time parameter prep: emb@w1 fold, lane-dense pad, bf16 storage."""
    w_in = jnp.dot(params["emb"], params["w1"],
                   precision=jax.lax.Precision.HIGHEST)            # (VOCAB, H)
    w4p = jnp.zeros((H, C_PAD), jnp.float32).at[:, :C].set(params["w4"])
    b4p = jnp.zeros((1, C_PAD), jnp.float32).at[:, :C].set(params["b4"])
    return {
        "w_in": w_in.astype(jnp.bfloat16),
        "b1": params["b1"],
        "w2": params["w2"].astype(jnp.bfloat16),
        "b2": params["b2"],
        "w3": params["w3"].astype(jnp.bfloat16),
        "b3": params["b3"],
        "w4p": w4p.astype(jnp.bfloat16),
        "b4p": b4p,
    }


def dan_forward(input_ids, labels, prepared, attention_masks=None):
    # attention_masks is unused by the original forward as well.
    del attention_masks
    bsz, seq = input_ids.shape

    # Normalized bag-of-words counts via scatter-add (counts @ W_in gives the
    # embedding mean already multiplied by w1).  1/seq multiples are exact in
    # bf16 for seq=16, so the cast is lossless here.
    counts = (jnp.zeros((bsz, VOCAB), jnp.float32)
              .at[jnp.arange(bsz)[:, None], input_ids].add(1.0 / seq)
              ).astype(jnp.bfloat16)                               # (B, VOCAB)
    labels2d = labels.astype(jnp.int32).reshape(bsz, 1)            # (B, 1)

    n_tiles = _num_batch_tiles()
    if bsz % n_tiles != 0 or (bsz // n_tiles) % 8 != 0:
        n_tiles = 1
    bt = bsz // n_tiles
    const = lambda i: (0, 0)      # weights stay VMEM-resident across tiles

    out = pl.pallas_call(
        dan_kernel,
        grid=(n_tiles,),
        in_specs=[
            pl.BlockSpec((bt, VOCAB), lambda i: (i, 0)),           # counts
            pl.BlockSpec((VOCAB, H), const),                       # W_in = emb@w1
            pl.BlockSpec((1, H), const),                           # b1
            pl.BlockSpec((H, H), const),                           # w2
            pl.BlockSpec((1, H), const),                           # b2
            pl.BlockSpec((H, H), const),                           # w3
            pl.BlockSpec((1, H), const),                           # b3
            pl.BlockSpec((H, C_PAD), const),                       # w4 (padded)
            pl.BlockSpec((1, C_PAD), const),                       # b4 (padded)
            pl.BlockSpec((bt, 1), lambda i: (i, 0)),               # labels
        ],
        out_specs=pl.BlockSpec((bt, C_PAD), lambda i: (i, 0)),     # logits|nll
        out_shape=jax.ShapeDtypeStruct((bsz, C_PAD), jnp.float32),
        compiler_params=pltpu.CompilerParams(
            dimension_semantics=("parallel",)),
    )(counts, prepared["w_in"], prepared["b1"],
      prepared["w2"], prepared["b2"],
      prepared["w3"], prepared["b3"],
      prepared["w4p"], prepared["b4p"], labels2d)

    logits = out[:, :C]
    loss = jnp.mean(out[:, C_PAD - 1])
    return {"loss": loss, "logits": logits}


def init_params(key):
    # TODO(synk): the real model loads pretrained glove.npy (vocab x 300);
    # a synthetic random embedding table is used here.
    ks = jax.random.split(key, 10)
    scale = 0.05
    return {
        "emb": jax.random.normal(ks[0], (VOCAB, D), jnp.float32),
        # weights stored as (in, out): equivalent to PyTorch Linear's W.T
        "w1": jax.random.normal(ks[1], (D, H), jnp.float32) * scale,
        "b1": jax.random.normal(ks[2], (1, H), jnp.float32) * scale,
        "w2": jax.random.normal(ks[3], (H, H), jnp.float32) * scale,
        "b2": jax.random.normal(ks[4], (1, H), jnp.float32) * scale,
        "w3": jax.random.normal(ks[5], (H, H), jnp.float32) * scale,
        "b3": jax.random.normal(ks[6], (1, H), jnp.float32) * scale,
        "w4": jax.random.normal(ks[7], (H, C), jnp.float32) * scale,
        "b4": jax.random.normal(ks[8], (1, C), jnp.float32) * scale,
    }


def _reference(input_ids, labels, params):
    e = jnp.take(params["emb"], input_ids, axis=0)
    avg = jnp.mean(e, axis=1)
    h = jax.nn.relu(avg @ params["w1"] + params["b1"])
    h = jax.nn.relu(h @ params["w2"] + params["b2"])
    h = jax.nn.relu(h @ params["w3"] + params["b3"])
    logits = h @ params["w4"] + params["b4"]
    logp = jax.nn.log_softmax(logits, axis=-1)
    loss = -jnp.mean(logp[jnp.arange(input_ids.shape[0]), labels])
    return loss, logits


if __name__ == "__main__":
    key = jax.random.PRNGKey(0)
    pkey, ikey, lkey = jax.random.split(key, 3)
    params = init_params(pkey)
    prepared = prepare_params(params)

    input_ids = jax.random.randint(ikey, (B, S), 0, VOCAB, dtype=jnp.int32)
    labels = jax.random.randint(lkey, (B,), 0, C, dtype=jnp.int32)

    out = dan_forward(input_ids, labels, prepared)
    jax.block_until_ready(out)

    ref_loss, ref_logits = _reference(input_ids, labels, params)
    assert out["logits"].shape == (B, C)
    # Tolerance covers bf16 operand storage / MXU default-precision rounding
    # and the (exact, but reassociated) emb@w1 fold versus the f32 reference.
    assert jnp.allclose(out["logits"], ref_logits, atol=3e-3, rtol=3e-3), (
        float(jnp.max(jnp.abs(out["logits"] - ref_logits))))
    assert jnp.allclose(out["loss"], ref_loss, atol=3e-3, rtol=3e-3), (
        float(out["loss"]), float(ref_loss))

    print("KERNEL_OK")
</pallas_src>

<mosaic_0001>
module attributes {stable_mosaic.version = 11 : i64} {
  func.func @dan_kernel(%arg0: i32, %arg1: memref<256x128xbf16, #tpu.memory_space<vmem>>, %arg2: memref<128x128xbf16, #tpu.memory_space<vmem>>, %arg3: memref<1x128xf32, #tpu.memory_space<vmem>>, %arg4: memref<128x128xbf16, #tpu.memory_space<vmem>>, %arg5: memref<1x128xf32, #tpu.memory_space<vmem>>, %arg6: memref<128x128xbf16, #tpu.memory_space<vmem>>, %arg7: memref<1x128xf32, #tpu.memory_space<vmem>>, %arg8: memref<128x128xbf16, #tpu.memory_space<vmem>>, %arg9: memref<1x128xf32, #tpu.memory_space<vmem>>, %arg10: memref<256x1xi32, #tpu.memory_space<vmem>>, %arg11: memref<256x128xf32, #tpu.memory_space<vmem>>) attributes {dimension_semantics = [#tpu.dimension_semantics<parallel>], iteration_bounds = array<i64: 1>, scalar_prefetch = 0 : i64, scratch_operands = 0 : i64, tpu.core_type = #tpu.core_type<tc>, window_params = [{transform_indices = @transform_0, window_bounds = array<i64: 256, 128>}, {pipeline_mode = #tpu.pipeline_mode<synchronous>, transform_indices = @transform_1, window_bounds = array<i64: 128, 128>}, {pipeline_mode = #tpu.pipeline_mode<synchronous>, transform_indices = @transform_2, window_bounds = array<i64: 1, 128>}, {pipeline_mode = #tpu.pipeline_mode<synchronous>, transform_indices = @transform_3, window_bounds = array<i64: 128, 128>}, {pipeline_mode = #tpu.pipeline_mode<synchronous>, transform_indices = @transform_4, window_bounds = array<i64: 1, 128>}, {pipeline_mode = #tpu.pipeline_mode<synchronous>, transform_indices = @transform_5, window_bounds = array<i64: 128, 128>}, {pipeline_mode = #tpu.pipeline_mode<synchronous>, transform_indices = @transform_6, window_bounds = array<i64: 1, 128>}, {pipeline_mode = #tpu.pipeline_mode<synchronous>, transform_indices = @transform_7, window_bounds = array<i64: 128, 128>}, {pipeline_mode = #tpu.pipeline_mode<synchronous>, transform_indices = @transform_8, window_bounds = array<i64: 1, 128>}, {transform_indices = @transform_9, window_bounds = array<i64: 256, 1>}, {transform_indices = @transform_10, window_bounds = array<i64: 256, 128>}]} {
    %c0 = arith.constant 0 : index
    %c0_0 = arith.constant 0 : index
    %0 = vector.load %arg1[%c0, %c0_0] : memref<256x128xbf16, #tpu.memory_space<vmem>>, vector<256x128xbf16>
    %c0_1 = arith.constant 0 : index
    %c0_2 = arith.constant 0 : index
    %1 = vector.load %arg2[%c0_1, %c0_2] : memref<128x128xbf16, #tpu.memory_space<vmem>>, vector<128x128xbf16>
    %cst = arith.constant dense<0.000000e+00> : vector<256x128xf32>
    %2 = tpu.matmul %0, %1, %cst {dimension_numbers = #tpu.dot_dimension_numbers<[1], [0], [0], [1], [0, 0, 1, 1], [], []>} : vector<256x128xbf16>, vector<128x128xbf16>, vector<256x128xf32> -> vector<256x128xf32>
    %c0_3 = arith.constant 0 : index
    %c0_4 = arith.constant 0 : index
    %3 = vector.load %arg3[%c0_3, %c0_4] : memref<1x128xf32, #tpu.memory_space<vmem>>, vector<1x128xf32>
    %4 = vector.broadcast %3 : vector<1x128xf32> to vector<256x128xf32>
    %5 = arith.addf %2, %4 : vector<256x128xf32>
    %cst_5 = arith.constant 0.000000e+00 : f32
    %6 = vector.broadcast %cst_5 : f32 to vector<256x128xf32>
    %7 = arith.maximumf %5, %6 : vector<256x128xf32>
    %8 = arith.truncf %7 : vector<256x128xf32> to vector<256x128xbf16>
    %c0_6 = arith.constant 0 : index
    %c0_7 = arith.constant 0 : index
    %9 = vector.load %arg4[%c0_6, %c0_7] : memref<128x128xbf16, #tpu.memory_space<vmem>>, vector<128x128xbf16>
    %cst_8 = arith.constant dense<0.000000e+00> : vector<256x128xf32>
    %10 = tpu.matmul %8, %9, %cst_8 {dimension_numbers = #tpu.dot_dimension_numbers<[1], [0], [0], [1], [0, 0, 1, 1], [], []>} : vector<256x128xbf16>, vector<128x128xbf16>, vector<256x128xf32> -> vector<256x128xf32>
    %c0_9 = arith.constant 0 : index
    %c0_10 = arith.constant 0 : index
    %11 = vector.load %arg5[%c0_9, %c0_10] : memref<1x128xf32, #tpu.memory_space<vmem>>, vector<1x128xf32>
    %12 = vector.broadcast %11 : vector<1x128xf32> to vector<256x128xf32>
    %13 = arith.addf %10, %12 : vector<256x128xf32>
    %cst_11 = arith.constant 0.000000e+00 : f32
    %14 = vector.broadcast %cst_11 : f32 to vector<256x128xf32>
    %15 = arith.maximumf %13, %14 : vector<256x128xf32>
    %16 = arith.truncf %15 : vector<256x128xf32> to vector<256x128xbf16>
    %c0_12 = arith.constant 0 : index
    %c0_13 = arith.constant 0 : index
    %17 = vector.load %arg6[%c0_12, %c0_13] : memref<128x128xbf16, #tpu.memory_space<vmem>>, vector<128x128xbf16>
    %cst_14 = arith.constant dense<0.000000e+00> : vector<256x128xf32>
    %18 = tpu.matmul %16, %17, %cst_14 {dimension_numbers = #tpu.dot_dimension_numbers<[1], [0], [0], [1], [0, 0, 1, 1], [], []>} : vector<256x128xbf16>, vector<128x128xbf16>, vector<256x128xf32> -> vector<256x128xf32>
    %c0_15 = arith.constant 0 : index
    %c0_16 = arith.constant 0 : index
    %19 = vector.load %arg7[%c0_15, %c0_16] : memref<1x128xf32, #tpu.memory_space<vmem>>, vector<1x128xf32>
    %20 = vector.broadcast %19 : vector<1x128xf32> to vector<256x128xf32>
    %21 = arith.addf %18, %20 : vector<256x128xf32>
    %cst_17 = arith.constant 0.000000e+00 : f32
    %22 = vector.broadcast %cst_17 : f32 to vector<256x128xf32>
    %23 = arith.maximumf %21, %22 : vector<256x128xf32>
    %24 = arith.truncf %23 : vector<256x128xf32> to vector<256x128xbf16>
    %c0_18 = arith.constant 0 : index
    %c0_19 = arith.constant 0 : index
    %25 = vector.load %arg8[%c0_18, %c0_19] : memref<128x128xbf16, #tpu.memory_space<vmem>>, vector<128x128xbf16>
    %cst_20 = arith.constant dense<0.000000e+00> : vector<256x128xf32>
    %26 = tpu.matmul %24, %25, %cst_20 {dimension_numbers = #tpu.dot_dimension_numbers<[1], [0], [0], [1], [0, 0, 1, 1], [], []>} : vector<256x128xbf16>, vector<128x128xbf16>, vector<256x128xf32> -> vector<256x128xf32>
    %c0_21 = arith.constant 0 : index
    %c0_22 = arith.constant 0 : index
    %27 = vector.load %arg9[%c0_21, %c0_22] : memref<1x128xf32, #tpu.memory_space<vmem>>, vector<1x128xf32>
    %28 = vector.broadcast %27 : vector<1x128xf32> to vector<256x128xf32>
    %29 = arith.addf %26, %28 : vector<256x128xf32>
    %30 = tpu.iota {dimensions = array<i32: 1>} : vector<256x128xi32>
    %c8_i32 = arith.constant 8 : i32
    %31 = vector.broadcast %c8_i32 : i32 to vector<256x128xi32>
    %32 = arith.cmpi slt, %30, %31 : vector<256x128xi32>
    %cst_23 = arith.constant -1.000000e+30 : f32
    %33 = vector.broadcast %cst_23 : f32 to vector<256x128xf32>
    %34 = arith.select %32, %29, %33 : vector<256x128xi1>, vector<256x128xf32>
    %cst_24 = arith.constant dense<0xFF800000> : vector<256xf32>
    %35 = vector.multi_reduction <maximumf>, %34, %cst_24 [1] : vector<256x128xf32> to vector<256xf32>
    %36 = vector.shape_cast %35 : vector<256xf32> to vector<256x1xf32>
    %37 = vector.broadcast %36 : vector<256x1xf32> to vector<256x128xf32>
    %38 = arith.subf %34, %37 : vector<256x128xf32>
    %39 = math.exp %38 : vector<256x128xf32>
    %cst_25 = arith.constant dense<0.000000e+00> : vector<256xf32>
    %40 = vector.multi_reduction <add>, %39, %cst_25 [1] : vector<256x128xf32> to vector<256xf32>
    %41 = vector.shape_cast %40 : vector<256xf32> to vector<256x1xf32>
    %42 = math.log %41 : vector<256x1xf32>
    %43 = arith.addf %36, %42 : vector<256x1xf32>
    %c0_26 = arith.constant 0 : index
    %c0_27 = arith.constant 0 : index
    %44 = vector.load %arg10[%c0_26, %c0_27] : memref<256x1xi32, #tpu.memory_space<vmem>>, vector<256x1xi32>
    %45 = vector.broadcast %44 : vector<256x1xi32> to vector<256x128xi32>
    %46 = arith.cmpi eq, %30, %45 : vector<256x128xi32>
    %cst_28 = arith.constant 0.000000e+00 : f32
    %47 = vector.broadcast %cst_28 : f32 to vector<256x128xf32>
    %48 = arith.select %46, %29, %47 : vector<256x128xi1>, vector<256x128xf32>
    %cst_29 = arith.constant dense<0.000000e+00> : vector<256xf32>
    %49 = vector.multi_reduction <add>, %48, %cst_29 [1] : vector<256x128xf32> to vector<256xf32>
    %50 = vector.shape_cast %49 : vector<256xf32> to vector<256x1xf32>
    %51 = arith.subf %43, %50 : vector<256x1xf32>
    %c127_i32 = arith.constant 127 : i32
    %52 = vector.broadcast %c127_i32 : i32 to vector<256x128xi32>
    %53 = arith.cmpi eq, %30, %52 : vector<256x128xi32>
    %54 = vector.shape_cast %51 : vector<256x1xf32> to vector<256x1xf32>
    %55 = vector.broadcast %54 : vector<256x1xf32> to vector<256x128xf32>
    %56 = arith.select %53, %55, %29 : vector<256x128xi1>, vector<256x128xf32>
    %c0_30 = arith.constant 0 : index
    %c0_31 = arith.constant 0 : index
    %57 = vector.load %arg11[%c0_30, %c0_31] : memref<256x128xf32, #tpu.memory_space<vmem>>, vector<256x128xf32>
    tpu.vector_store %arg11[%c0_30, %c0_31], %56 {strides = array<i32>} : memref<256x128xf32, #tpu.memory_space<vmem>>, vector<256x128xf32>,
    return
  }
  func.func @transform_0(%arg0: i32) -> (i32, i32) {
    %c0_i32 = arith.constant 0 : i32
    %c0_i32_0 = arith.constant 0 : i32
    return %arg0, %c0_i32 : i32, i32
  }
  func.func @transform_1(%arg0: i32) -> (i32, i32) {
    %c0_i32 = arith.constant 0 : i32
    %c0_i32_0 = arith.constant 0 : i32
    %c0_i32_1 = arith.constant 0 : i32
    return %c0_i32, %c0_i32_0 : i32, i32
  }
  func.func @transform_2(%arg0: i32) -> (i32, i32) {
    %c0_i32 = arith.constant 0 : i32
    %c0_i32_0 = arith.constant 0 : i32
    %c0_i32_1 = arith.constant 0 : i32
    return %c0_i32, %c0_i32_0 : i32, i32
  }
  func.func @transform_3(%arg0: i32) -> (i32, i32) {
    %c0_i32 = arith.constant 0 : i32
    %c0_i32_0 = arith.constant 0 : i32
    %c0_i32_1 = arith.constant 0 : i32
    return %c0_i32, %c0_i32_0 : i32, i32
  }
  func.func @transform_4(%arg0: i32) -> (i32, i32) {
    %c0_i32 = arith.constant 0 : i32
    %c0_i32_0 = arith.constant 0 : i32
    %c0_i32_1 = arith.constant 0 : i32
    return %c0_i32, %c0_i32_0 : i32, i32
  }
  func.func @transform_5(%arg0: i32) -> (i32, i32) {
    %c0_i32 = arith.constant 0 : i32
    %c0_i32_0 = arith.constant 0 : i32
    %c0_i32_1 = arith.constant 0 : i32
    return %c0_i32, %c0_i32_0 : i32, i32
  }
  func.func @transform_6(%arg0: i32) -> (i32, i32) {
    %c0_i32 = arith.constant 0 : i32
    %c0_i32_0 = arith.constant 0 : i32
    %c0_i32_1 = arith.constant 0 : i32
    return %c0_i32, %c0_i32_0 : i32, i32
  }
  func.func @transform_7(%arg0: i32) -> (i32, i32) {
    %c0_i32 = arith.constant 0 : i32
    %c0_i32_0 = arith.constant 0 : i32
    %c0_i32_1 = arith.constant 0 : i32
    return %c0_i32, %c0_i32_0 : i32, i32
  }
  func.func @transform_8(%arg0: i32) -> (i32, i32) {
    %c0_i32 = arith.constant 0 : i32
    %c0_i32_0 = arith.constant 0 : i32
    %c0_i32_1 = arith.constant 0 : i32
    return %c0_i32, %c0_i32_0 : i32, i32
  }
  func.func @transform_9(%arg0: i32) -> (i32, i32) {
    %c0_i32 = arith.constant 0 : i32
    %c0_i32_0 = arith.constant 0 : i32
    return %arg0, %c0_i32 : i32, i32
  }
  func.func @transform_10(%arg0: i32) -> (i32, i32) {
    %c0_i32 = arith.constant 0 : i32
    %c0_i32_0 = arith.constant 0 : i32
    return %arg0, %c0_i32 : i32, i32
  }
}

</mosaic_0001>

<bundles_post_ra>
// kernel: tpu_custom_call.1
= control target key start
LH: loop header
LB: loop body
LE: loop exit
PB: predicated region body
PF: predicated region fallthrough
CT: control target
= control target key end

     0   :  { %15 = vsyncpa [#allocation3], 0  ;;  %s3719_s0 = inlined_call_operand.vmem [shape: bf16[256,128], index: 0, kind: input, shape index: {}]   ;;  %s3720_s1 = inlined_call_operand.vmem [shape: bf16[128,128], index: 1, kind: input, shape index: {}]   ;;  %s3721_s2 = inlined_call_operand.vmem [shape: f32[1,128], index: 2, kind: input, shape index: {}]   ;;  %s3722_s3 = inlined_call_operand.vmem [shape: bf16[128,128], index: 3, kind: input, shape index: {}]   ;;  %s3723_s4 = inlined_call_operand.vmem [shape: f32[1,128], index: 4, kind: input, shape index: {}]   ;;  %s3724_s5 = inlined_call_operand.hbm [shape: bf16[128,128], index: 5, kind: input, shape index: {}]   ;;  %s3725_s6 = inlined_call_operand.vmem [shape: f32[1,128], index: 6, kind: input, shape index: {}]   ;;  %s3726_s7 = inlined_call_operand.hbm [shape: bf16[128,128], index: 7, kind: input, shape index: {}]   ;;  %s3727_s8 = inlined_call_operand.vmem [shape: f32[1,128], index: 8, kind: input, shape index: {}]   ;;  %s3728_s9 = inlined_call_operand.vmem [shape: s32[256,1], index: 9, kind: input, shape index: {}]   ;;  %s3729_s10 = inlined_call_operand.hbm [shape: f32[256,128], index: 10, kind: output, shape index: {}]  }
   0x1   :  { %16 = vsyncpa [#allocation6], 0 }
   0x2   :  { %17 = vsyncpa [#allocation4], 0  ;;  %s2589_s13 = smov [#allocation2]   ;;  %s2517_s17 = scalar_lea.hbm %s3724_s5, 1024 }
   0x3   :  { %s33_s14 = sshll.u32 %s2589_s13, 4  ;;  %p2518_p0 = scmp.ne.s32.totalorder %s3724_s5, %s2517_s17  ;;  %s34_s14 = int_to_ptr.vmem [resolvable:$true] %s33_s14 }
   0x4   :  { %p2521_p1 = scmp.lt.u32.totalorder %s2517_s17, %s3724_s5 }
   0x6   :  { %p2523_p2 = pnand %p2521_p1, %p2518_p0 }
   0x8   :  { %2526 = shalt.err (!%p2523_p2)
}
   0x9   :  { %s2527_s22 = scalar_lea.vmem %s34_s14, 1024  ;;  %p2532_p4 = scmp.lt.s32.totalorder %s34_s14, %s34_s14 }
   0xa   :  { %p2528_p3 = scmp.ne.s32.totalorder %s34_s14, %s2527_s22  ;;  %p2533_p5 = scmp.lt.s32.totalorder %s2527_s22, %s2527_s22 }
   0xc   :  { %p2534_p6 = por %p2533_p5, %p2532_p4 }
   0xe   :  { %p2535_p7 = pnand %p2534_p6, %p2528_p3 }
  0x10   :  { %2538 = shalt.err (!%p2535_p7)
}
  0x11   :  { %s2590_s23 = smov 64   ;;  %s2591_s24 = smov 4  }
  0x12   :  { %39 = dma.hbm_to_vmem [thread:$0]  %s3724_s5, 1024, %s34_s14, [#allocation3], %s2590_s23, %s2590_s23, %s2591_s24  }
  0x13   :  { %s2592_s27 = smov [#allocation5]   ;;  %s2539_s11 = scalar_lea.hbm %s3726_s7, 1024 }
  0x14   :  { %s47_s28 = sshll.u32 %s2592_s27, 4  ;;  %p2540_p8 = scmp.ne.s32.totalorder %s3726_s7, %s2539_s11  ;;  %s48_s28 = int_to_ptr.vmem [resolvable:$true] %s47_s28 }
  0x15   :  { %p2543_p9 = scmp.lt.u32.totalorder %s2539_s11, %s3726_s7 }
  0x17   :  { %p2545_p10 = pnand %p2543_p9, %p2540_p8 }
  0x19   :  { %2548 = shalt.err (!%p2545_p10)
}
  0x1a   :  { %s2549_s17 = scalar_lea.vmem %s48_s28, 1024  ;;  %p2554_p12 = scmp.lt.s32.totalorder %s48_s28, %s48_s28 }
  0x1b   :  { %p2550_p11 = scmp.ne.s32.totalorder %s48_s28, %s2549_s17  ;;  %p2555_p13 = scmp.lt.s32.totalorder %s2549_s17, %s2549_s17 }
  0x1d   :  { %p2556_p0 = por %p2555_p13, %p2554_p12 }
  0x1f   :  { %p2557_p1 = pnand %p2556_p0, %p2550_p11 }
  0x21   :  { %2560 = shalt.err (!%p2557_p1)
}
  0x22   :  { %53 = dma.hbm_to_vmem [thread:$0]  %s3726_s7, 1024, %s48_s28, [#allocation6], %s2590_s23, %s2590_s23, %s2591_s24  }
  0x23   :  { %2583 = dma.done.wait [#allocation3], 1024  }
  0x24   :  { %2584 = vsyncadd [#allocation3], 4294966272 }
  0x25   :  { %2585 = dma.done.wait [#allocation6], 1024  }
  0x26   :  { %2586 = vsyncadd [#allocation6], 4294966272  ;;  %v2341_v0 = vld [vmem:[%s3720_s1] sm:$0xff]   ;;  %v2342_v1 = vld [vmem:[%s3720_s1 + $0x8] sm:$0xff]  }
  0x27   :  { %2139 = vmatprep.subr.bf16.mxu0 %v2341_v0  ;;  %v2343_v2 = vld [vmem:[%s3720_s1 + $0x10] sm:$0xff]   ;;  %v2344_v3 = vld [vmem:[%s3720_s1 + $0x18] sm:$0xff]   ;;  %v2349_v4 = vld [vmem:[%s3719_s0] sm:$0xff]  }
  0x28   :  { %2140 = vmatpush3.bf16.msra.mxu0 %v2341_v0  ;;  %2155 = vmatprep.mubr.bf16.mxu0 %v2349_v4  ;;  %v2345_v5 = vld [vmem:[%s3720_s1 + $0x20] sm:$0xff]   ;;  %v2346_v6 = vld [vmem:[%s3720_s1 + $0x28] sm:$0xff]   ;;  %v2347_v7 = vld [vmem:[%s3720_s1 + $0x30] sm:$0xff]  }
  0x29   :  { %2141 = vmatprep.subr.bf16.mxu0 %v2342_v1  ;;  %v2348_v8 = vld [vmem:[%s3720_s1 + $0x38] sm:$0xff]   ;;  %v2365_v9 = vld [vmem:[%s3722_s3] sm:$0xff]   ;;  %v2366_v10 = vld [vmem:[%s3722_s3 + $0x8] sm:$0xff]  }
  0x2a   :  { %2187 = vmatprep.subr.bf16.mxu1 %v2365_v9  ;;  %v2350_v11 = vld [vmem:[%s3719_s0 + $0x8] sm:$0xff]   ;;  %v2367_v12 = vld [vmem:[%s3722_s3 + $0x10] sm:$0xff]   ;;  %v2368_v14 = vld [vmem:[%s3722_s3 + $0x18] sm:$0xff]  }
  0x2b   :  { %2188 = vmatpush3.bf16.msra.mxu1 %v2365_v9  ;;  %v2351_v13 = vld [vmem:[%s3719_s0 + $0x10] sm:$0xff]   ;;  %v2369_v15 = vld [vmem:[%s3722_s3 + $0x20] sm:$0xff]   ;;  %v2352_v16 = vld [vmem:[%s3719_s0 + $0x18] sm:$0xff]  }
  0x2c   :  { %2142 = vmatpush3.bf16.msra.mxu0 %v2342_v1  ;;  %2189 = vmatprep.subr.bf16.mxu1 %v2366_v10  ;;  %v2353_v17 = vld [vmem:[%s3719_s0 + $0x20] sm:$0xff]   ;;  %v2370_v18 = vld [vmem:[%s3722_s3 + $0x28] sm:$0xff]   ;;  %v2355_v20 = vld [vmem:[%s3719_s0 + $0x30] sm:$0xff]  }
  0x2d   :  { %2143 = vmatprep.subr.bf16.mxu0 %v2343_v2  ;;  %v2354_v19 = vld [vmem:[%s3719_s0 + $0x28] sm:$0xff]   ;;  %v2356_v21 = vld [vmem:[%s3719_s0 + $0x38] sm:$0xff]   ;;  %v2357_v22 = vld [vmem:[%s3719_s0 + $0x40] sm:$0xff]  }
  0x2e   :  { %v2358_v23 = vld [vmem:[%s3719_s0 + $0x48] sm:$0xff]   ;;  %v2359_v24 = vld [vmem:[%s3719_s0 + $0x50] sm:$0xff]   ;;  %v2360_v25 = vld [vmem:[%s3719_s0 + $0x58] sm:$0xff]  }
  0x2f   :  { %2190 = vmatpush3.bf16.msra.mxu1 %v2366_v10  ;;  %v2361_v26 = vld [vmem:[%s3719_s0 + $0x60] sm:$0xff]   ;;  %v2362_v27 = vld [vmem:[%s3719_s0 + $0x68] sm:$0xff]   ;;  %v2363_v28 = vld [vmem:[%s3719_s0 + $0x70] sm:$0xff]  }
  0x30   :  { %2144 = vmatpush3.bf16.msra.mxu0 %v2343_v2  ;;  %2191 = vmatprep.subr.bf16.mxu1 %v2367_v12  ;;  %v2364_v29 = vld [vmem:[%s3719_s0 + $0x78] sm:$0xff]   ;;  %v2371_v30 = vld [vmem:[%s3722_s3 + $0x30] sm:$0xff]   ;;  %v2373_v32 = vld [vmem:[#allocation2] sm:$0xff]  }
  0x31   :  { %2145 = vmatprep.subr.bf16.mxu0 %v2344_v3  ;;  %v2372_v31 = vld [vmem:[%s3722_s3 + $0x38] sm:$0xff]   ;;  %v2374_v33 = vld [vmem:[#allocation2 + $0x8] sm:$0xff]   ;;  %v2375_v34 = vld [vmem:[#allocation2 + $0x10] sm:$0xff]  }
  0x32   :  { %v2376_v35 = vld [vmem:[#allocation2 + $0x18] sm:$0xff]   ;;  %v2377_v36 = vld [vmem:[#allocation2 + $0x20] sm:$0xff]   ;;  %v2378_v37 = vld [vmem:[#allocation2 + $0x28] sm:$0xff]  }
  0x33   :  { %2192 = vmatpush3.bf16.msra.mxu1 %v2367_v12  ;;  %v2379_v38 = vld [vmem:[#allocation2 + $0x30] sm:$0xff]   ;;  %v2775_v39 = vld [vmem:[%s3721_s2] ss:$0 sm:$0xff] }
  0x34   :  { %2146 = vmatpush3.bf16.msra.mxu0 %v2344_v3  ;;  %2193 = vmatprep.subr.bf16.mxu1 %v2368_v14 }
  0x35   :  { %2147 = vmatprep.subr.bf16.mxu0 %v2345_v5 }
  0x37   :  { %2194 = vmatpush3.bf16.msra.mxu1 %v2368_v14 }
  0x38   :  { %2148 = vmatpush3.bf16.msra.mxu0 %v2345_v5  ;;  %2195 = vmatprep.subr.bf16.mxu1 %v2369_v15 }
  0x39   :  { %2149 = vmatprep.subr.bf16.mxu0 %v2346_v6 }
  0x3b   :  { %2196 = vmatpush3.bf16.msra.mxu1 %v2369_v15 }
  0x3c   :  { %2150 = vmatpush3.bf16.msra.mxu0 %v2346_v6  ;;  %2197 = vmatprep.subr.bf16.mxu1 %v2370_v18 }
  0x3d   :  { %2151 = vmatprep.subr.bf16.mxu0 %v2347_v7 }
  0x3f   :  { %2198 = vmatpush3.bf16.msra.mxu1 %v2370_v18 }
  0x40   :  { %2152 = vmatpush3.bf16.msra.mxu0 %v2347_v7  ;;  %2199 = vmatprep.subr.bf16.mxu1 %v2371_v30 }
  0x41   :  { %2153 = vmatprep.subr.bf16.mxu0 %v2348_v8 }
  0x43   :  { %2200 = vmatpush3.bf16.msra.mxu1 %v2371_v30 }
  0x44   :  { %2154 = vmatpush3.bf16.msra.mxu0 %v2348_v8  ;;  %2201 = vmatprep.subr.bf16.mxu1 %v2372_v31 }
  0x45   :  { %2235 = vmatprep.subr.bf16.mxu0 %v2373_v32 }
  0x47   :  { %2156 = vmatmul.mubr.bf16.vlgmr.msra.gmra.mrb[0].mxu0 %v2350_v11  ;;  %2202 = vmatpush3.bf16.msra.mxu1 %v2372_v31 }
  0x48   :  { %2159 = vmatprep.mubr.bf16.mxu0 %v2351_v13  ;;  %2236 = vmatpush3.bf16.msra.mxu0 %v2373_v32 }
  0x49   :  { %2237 = vmatprep.subr.bf16.mxu0 %v2374_v33 }
  0x4c   :  { %2238 = vmatpush3.bf16.msra.mxu0 %v2374_v33 }
  0x4d   :  { %2239 = vmatprep.subr.bf16.mxu0 %v2375_v34 }
  0x4f   :  { %2160 = vmatmul.mubr.bf16.gmra.mrb[4].mxu0 %v2352_v16 }
  0x50   :  { %2163 = vmatprep.mubr.bf16.mxu0 %v2353_v17  ;;  %2240 = vmatpush3.bf16.msra.mxu0 %v2375_v34 }
  0x51   :  { %2241 = vmatprep.subr.bf16.mxu0 %v2376_v35 }
  0x54   :  { %2242 = vmatpush3.bf16.msra.mxu0 %v2376_v35 }
  0x55   :  { %2243 = vmatprep.subr.bf16.mxu0 %v2377_v36 }
  0x57   :  { %2164 = vmatmul.mubr.bf16.gmra.mrb[8].mxu0 %v2354_v19 }
  0x58   :  { %2167 = vmatprep.mubr.bf16.mxu0 %v2355_v20  ;;  %2244 = vmatpush3.bf16.msra.mxu0 %v2377_v36 }
  0x59   :  { %2245 = vmatprep.subr.bf16.mxu0 %v2378_v37 }
  0x5c   :  { %2246 = vmatpush3.bf16.msra.mxu0 %v2378_v37 }
  0x5d   :  { %2247 = vmatprep.subr.bf16.mxu0 %v2379_v38 }
  0x5f   :  { %2168 = vmatmul.mubr.bf16.gmra.mrb[12].mxu0 %v2356_v21 }
  0x60   :  { %2171 = vmatprep.mubr.bf16.mxu0 %v2357_v22  ;;  %2248 = vmatpush3.bf16.msra.mxu0 %v2379_v38 }
  0x67   :  { %2172 = vmatmul.mubr.bf16.gmra.mrb[16].mxu0 %v2358_v23 }
  0x68   :  { %2175 = vmatprep.mubr.bf16.mxu0 %v2359_v24 }
  0x6f   :  { %2176 = vmatmul.mubr.bf16.gmra.mrb[20].mxu0 %v2360_v25 }
  0x70   :  { %2179 = vmatprep.mubr.bf16.mxu0 %v2361_v26 }
  0x77   :  { %2180 = vmatmul.mubr.bf16.gmra.mrb[24].mxu0 %v2362_v27 }
  0x78   :  { %2183 = vmatprep.mubr.bf16.mxu0 %v2363_v28 }
  0x7f   :  { %2184 = vmatmul.mubr.bf16.gmra.mrb[28].mxu0 %v2364_v29 }
 0x11a   :  { %v2157_v40 = vpop.f32.mrb[0].mxu0 }
 0x11b   :  { %v307_v41 = vadd.f32 %v2157_v40, %v2775_v39  ;;  %v298_v42 = vpop.f32.mrb[1].mxu0 }
 0x11c   :  { %v299_v43 = vadd.f32 %v2775_v39, %v298_v42  ;;  %v2158_v44 = vpop.f32.mrb[2].mxu0 }
 0x11d   :  { %v310_v45 = vadd.f32 %v2158_v44, %v2775_v39  ;;  %v301_v46 = vpop.f32.mrb[3].mxu0  ;;  %v427_v48 = vmax.f32 %v307_v41, 0.0 }
 0x11e   :  { %v302_v47 = vadd.f32 %v2775_v39, %v301_v46  ;;  %v425_v50 = vmax.f32 %v299_v43, 0.0 }
 0x11f   :  { %v428_v49 = vmax.f32 %v310_v45, 0.0 }
 0x120   :  { %v426_v51 = vmax.f32 %v302_v47, 0.0 }
 0x121   :  { %v458_v52 = vpack.c.bf16 %v428_v49, %v427_v48 }
 0x122   :  { %v2161_v53 = vpop.f32.mrb[4].mxu0  ;;  %v457_v54 = vpack.c.bf16 %v426_v51, %v425_v50 }
 0x123   :  { %v323_v55 = vadd.f32 %v2161_v53, %v2775_v39  ;;  %v314_v56 = vpop.f32.mrb[5].mxu0 }
 0x124   :  { %v315_v57 = vadd.f32 %v2775_v39, %v314_v56  ;;  %v2162_v58 = vpop.f32.mrb[6].mxu0  ;;  %2203 = vmatprep.mubr.bf16.mxu1 %v457_v54 }
 0x125   :  { %v431_v59 = vmax.f32 %v323_v55, 0.0  ;;  %v326_v60 = vadd.f32 %v2162_v58, %v2775_v39  ;;  %v317_v61 = vpop.f32.mrb[7].mxu0  ;;  %2204 = vmatmul.mubr.bf16.vlgmr.msra.gmra.mrb[0].mxu1 %v458_v52 }
 0x126   :  { %v429_v62 = vmax.f32 %v315_v57, 0.0  ;;  %v318_v63 = vadd.f32 %v2775_v39, %v317_v61 }
 0x127   :  { %v432_v0 = vmax.f32 %v326_v60, 0.0 }
 0x128   :  { %v430_v1 = vmax.f32 %v318_v63, 0.0 }
 0x129   :  { %v460_v2 = vpack.c.bf16 %v432_v0, %v431_v59 }
 0x12a   :  { %v459_v3 = vpack.c.bf16 %v430_v1, %v429_v62  ;;  %v2165_v4 = vpop.f32.mrb[8].mxu0 }
 0x12b   :  { %v339_v5 = vadd.f32 %v2165_v4, %v2775_v39  ;;  %v330_v6 = vpop.f32.mrb[9].mxu0 }
 0x12c   :  { %v331_v7 = vadd.f32 %v2775_v39, %v330_v6  ;;  %v2166_v8 = vpop.f32.mrb[10].mxu0  ;;  %2207 = vmatprep.mubr.bf16.mxu1 %v459_v3 }
 0x12d   :  { %v435_v9 = vmax.f32 %v339_v5, 0.0  ;;  %v342_v10 = vadd.f32 %v2166_v8, %v2775_v39  ;;  %v333_v11 = vpop.f32.mrb[11].mxu0  ;;  %2208 = vmatmul.mubr.bf16.gmra.mrb[4].mxu1 %v460_v2 }
 0x12e   :  { %v433_v12 = vmax.f32 %v331_v7, 0.0  ;;  %v334_v13 = vadd.f32 %v2775_v39, %v333_v11 }
 0x12f   :  { %v436_v14 = vmax.f32 %v342_v10, 0.0 }
 0x130   :  { %v434_v15 = vmax.f32 %v334_v13, 0.0 }
 0x131   :  { %v462_v16 = vpack.c.bf16 %v436_v14, %v435_v9 }
 0x132   :  { %v461_v17 = vpack.c.bf16 %v434_v15, %v433_v12  ;;  %v2169_v18 = vpop.f32.mrb[12].mxu0 }
 0x133   :  { %v355_v19 = vadd.f32 %v2169_v18, %v2775_v39  ;;  %v346_v20 = vpop.f32.mrb[13].mxu0 }
 0x134   :  { %v347_v21 = vadd.f32 %v2775_v39, %v346_v20  ;;  %v2170_v22 = vpop.f32.mrb[14].mxu0  ;;  %2211 = vmatprep.mubr.bf16.mxu1 %v461_v17 }
 0x135   :  { %v439_v23 = vmax.f32 %v355_v19, 0.0  ;;  %v358_v24 = vadd.f32 %v2170_v22, %v2775_v39  ;;  %v349_v25 = vpop.f32.mrb[15].mxu0  ;;  %2212 = vmatmul.mubr.bf16.gmra.mrb[8].mxu1 %v462_v16 }
 0x136   :  { %v437_v26 = vmax.f32 %v347_v21, 0.0  ;;  %v350_v27 = vadd.f32 %v2775_v39, %v349_v25  ;;  %v2380_v25 = vld [vmem:[#allocation2 + $0x38] sm:$0xff]  }
 0x137   :  { %v440_v28 = vmax.f32 %v358_v24, 0.0  ;;  %2249 = vmatprep.subr.bf16.mxu0 %v2380_v25 }
 0x138   :  { %v438_v29 = vmax.f32 %v350_v27, 0.0  ;;  %2250 = vmatpush3.bf16.msra.mxu0 %v2380_v25  ;;  %v2382_v27 = vld [vmem:[#allocation5 + $0x8] sm:$0xff]  }
 0x139   :  { %v464_v30 = vpack.c.bf16 %v440_v28, %v439_v23  ;;  %v2383_v28 = vld [vmem:[#allocation5 + $0x10] sm:$0xff]  }
 0x13a   :  { %v463_v31 = vpack.c.bf16 %v438_v29, %v437_v26  ;;  %v2173_v32 = vpop.f32.mrb[16].mxu0  ;;  %v2381_v26 = vld [vmem:[#allocation5] sm:$0xff]   ;;  %v2384_v29 = vld [vmem:[#allocation5 + $0x18] sm:$0xff]  }
 0x13b   :  { %v371_v33 = vadd.f32 %v2173_v32, %v2775_v39  ;;  %v362_v34 = vpop.f32.mrb[17].mxu0  ;;  %2283 = vmatprep.subr.bf16.mxu1 %v2381_v26  ;;  %v2812_v32 = vld [vmem:[%s3723_s4] ss:$0 sm:$0xff] }
 0x13c   :  { %v363_v35 = vadd.f32 %v2775_v39, %v362_v34  ;;  %v2174_v36 = vpop.f32.mrb[18].mxu0  ;;  %2215 = vmatprep.mubr.bf16.mxu1 %v463_v31  ;;  %2284 = vmatpush3.bf16.msra.mxu1 %v2381_v26  ;;  %v2387_v31 = vld [vmem:[#allocation5 + $0x30] sm:$0xff]  }
 0x13d   :  { %v443_v37 = vmax.f32 %v371_v33, 0.0  ;;  %v374_v38 = vadd.f32 %v2174_v36, %v2775_v39  ;;  %v365_v40 = vpop.f32.mrb[19].mxu0  ;;  %2216 = vmatmul.mubr.bf16.gmra.mrb[12].mxu1 %v464_v30  ;;  %2285 = vmatprep.subr.bf16.mxu1 %v2382_v27  ;;  %v2386_v30 = vld [vmem:[#allocation5 + $0x28] sm:$0xff]  }
 0x13e   :  { %v441_v41 = vmax.f32 %v363_v35, 0.0  ;;  %v366_v42 = vadd.f32 %v2775_v39, %v365_v40 }
 0x13f   :  { %v444_v43 = vmax.f32 %v374_v38, 0.0 }
 0x140   :  { %v442_v44 = vmax.f32 %v366_v42, 0.0  ;;  %2286 = vmatpush3.bf16.msra.mxu1 %v2382_v27 }
 0x141   :  { %v466_v45 = vpack.c.bf16 %v444_v43, %v443_v37  ;;  %2287 = vmatprep.subr.bf16.mxu1 %v2383_v28 }
 0x142   :  { %v465_v46 = vpack.c.bf16 %v442_v44, %v441_v41  ;;  %v2177_v47 = vpop.f32.mrb[20].mxu0 }
 0x143   :  { %v387_v48 = vadd.f32 %v2177_v47, %v2775_v39  ;;  %v378_v49 = vpop.f32.mrb[21].mxu0 }
 0x144   :  { %v379_v50 = vadd.f32 %v2775_v39, %v378_v49  ;;  %v2178_v51 = vpop.f32.mrb[22].mxu0  ;;  %2219 = vmatprep.mubr.bf16.mxu1 %v465_v46  ;;  %2288 = vmatpush3.bf16.msra.mxu1 %v2383_v28 }
 0x145   :  { %v447_v52 = vmax.f32 %v387_v48, 0.0  ;;  %v390_v53 = vadd.f32 %v2178_v51, %v2775_v39  ;;  %v381_v54 = vpop.f32.mrb[23].mxu0  ;;  %2220 = vmatmul.mubr.bf16.gmra.mrb[16].mxu1 %v466_v45  ;;  %2289 = vmatprep.subr.bf16.mxu1 %v2384_v29 }
 0x146   :  { %v445_v55 = vmax.f32 %v379_v50, 0.0  ;;  %v382_v56 = vadd.f32 %v2775_v39, %v381_v54 }
 0x147   :  { %v448_v57 = vmax.f32 %v390_v53, 0.0 }
 0x148   :  { %v446_v58 = vmax.f32 %v382_v56, 0.0  ;;  %2290 = vmatpush3.bf16.msra.mxu1 %v2384_v29 }
 0x149   :  { %v468_v59 = vpack.c.bf16 %v448_v57, %v447_v52 }
 0x14a   :  { %v467_v60 = vpack.c.bf16 %v446_v58, %v445_v55  ;;  %v2181_v61 = vpop.f32.mrb[24].mxu0 }
 0x14b   :  { %v403_v62 = vadd.f32 %v2181_v61, %v2775_v39  ;;  %v394_v63 = vpop.f32.mrb[25].mxu0 }
 0x14c   :  { %v395_v0 = vadd.f32 %v2775_v39, %v394_v63  ;;  %v2182_v1 = vpop.f32.mrb[26].mxu0  ;;  %2223 = vmatprep.mubr.bf16.mxu1 %v467_v60 }
 0x14d   :  { %v451_v2 = vmax.f32 %v403_v62, 0.0  ;;  %v406_v3 = vadd.f32 %v2182_v1, %v2775_v39  ;;  %v397_v4 = vpop.f32.mrb[27].mxu0  ;;  %2224 = vmatmul.mubr.bf16.gmra.mrb[20].mxu1 %v468_v59 }
 0x14e   :  { %v449_v5 = vmax.f32 %v395_v0, 0.0  ;;  %v398_v6 = vadd.f32 %v2775_v39, %v397_v4 }
 0x14f   :  { %v452_v7 = vmax.f32 %v406_v3, 0.0 }
 0x150   :  { %v450_v8 = vmax.f32 %v398_v6, 0.0 }
 0x151   :  { %v470_v9 = vpack.c.bf16 %v452_v7, %v451_v2 }
 0x152   :  { %v469_v10 = vpack.c.bf16 %v450_v8, %v449_v5  ;;  %v2185_v11 = vpop.f32.mrb[28].mxu0 }
 0x153   :  { %v419_v12 = vadd.f32 %v2185_v11, %v2775_v39  ;;  %v410_v13 = vpop.f32.mrb[29].mxu0 }
 0x154   :  { %v411_v14 = vadd.f32 %v2775_v39, %v410_v13  ;;  %v2186_v15 = vpop.f32.mrb[30].mxu0  ;;  %2227 = vmatprep.mubr.bf16.mxu1 %v469_v10 }
 0x155   :  { %v455_v16 = vmax.f32 %v419_v12, 0.0  ;;  %v422_v17 = vadd.f32 %v2186_v15, %v2775_v39  ;;  %v413_v18 = vpop.f32.mrb[31].mxu0  ;;  %2228 = vmatmul.mubr.bf16.gmra.mrb[24].mxu1 %v470_v9 }
 0x156   :  { %v453_v19 = vmax.f32 %v411_v14, 0.0  ;;  %v414_v20 = vadd.f32 %v2775_v39, %v413_v18  ;;  %v2385_v39 = vld [vmem:[#allocation5 + $0x20] sm:$0xff]  }
 0x157   :  { %v456_v21 = vmax.f32 %v422_v17, 0.0  ;;  %2291 = vmatprep.subr.bf16.mxu1 %v2385_v39 }
 0x158   :  { %v454_v22 = vmax.f32 %v414_v20, 0.0  ;;  %2292 = vmatpush3.bf16.msra.mxu1 %v2385_v39 }
 0x159   :  { %v472_v23 = vpack.c.bf16 %v456_v21, %v455_v16  ;;  %2293 = vmatprep.subr.bf16.mxu1 %v2386_v30 }
 0x15a   :  { %v471_v24 = vpack.c.bf16 %v454_v22, %v453_v19 }
 0x15c   :  { %2231 = vmatprep.mubr.bf16.mxu1 %v471_v24  ;;  %2294 = vmatpush3.bf16.msra.mxu1 %v2386_v30 }
 0x15d   :  { %2232 = vmatmul.mubr.bf16.gmra.mrb[28].mxu1 %v472_v23  ;;  %2295 = vmatprep.subr.bf16.mxu1 %v2387_v31 }
 0x160   :  { %2296 = vmatpush3.bf16.msra.mxu1 %v2387_v31 }
 0x1f8   :  { %v2205_v33 = vpop.f32.mrb[0].mxu1 }
 0x1f9   :  { %v587_v34 = vadd.f32 %v2205_v33, %v2812_v32  ;;  %v578_v35 = vpop.f32.mrb[1].mxu1 }
 0x1fa   :  { %v579_v36 = vadd.f32 %v2812_v32, %v578_v35  ;;  %v2206_v37 = vpop.f32.mrb[2].mxu1 }
 0x1fb   :  { %v590_v38 = vadd.f32 %v2206_v37, %v2812_v32  ;;  %v581_v40 = vpop.f32.mrb[3].mxu1  ;;  %v707_v42 = vmax.f32 %v587_v34, 0.0 }
 0x1fc   :  { %v582_v41 = vadd.f32 %v2812_v32, %v581_v40  ;;  %v705_v44 = vmax.f32 %v579_v36, 0.0 }
 0x1fd   :  { %v708_v43 = vmax.f32 %v590_v38, 0.0 }
 0x1fe   :  { %v706_v45 = vmax.f32 %v582_v41, 0.0 }
 0x1ff   :  { %v738_v46 = vpack.c.bf16 %v708_v43, %v707_v42 }
 0x200   :  { %v737_v47 = vpack.c.bf16 %v706_v45, %v705_v44  ;;  %v2209_v48 = vpop.f32.mrb[4].mxu1 }
 0x201   :  { %v603_v49 = vadd.f32 %v2209_v48, %v2812_v32  ;;  %v594_v50 = vpop.f32.mrb[5].mxu1 }
 0x202   :  { %v595_v51 = vadd.f32 %v2812_v32, %v594_v50  ;;  %v2210_v52 = vpop.f32.mrb[6].mxu1  ;;  %2251 = vmatprep.mubr.bf16.mxu0 %v737_v47 }
 0x203   :  { %v711_v53 = vmax.f32 %v603_v49, 0.0  ;;  %v606_v54 = vadd.f32 %v2210_v52, %v2812_v32  ;;  %v597_v55 = vpop.f32.mrb[7].mxu1  ;;  %2252 = vmatmul.mubr.bf16.vlgmr.msra.gmra.mrb[32].mxu0 %v738_v46 }
 0x204   :  { %v709_v56 = vmax.f32 %v595_v51, 0.0  ;;  %v598_v57 = vadd.f32 %v2812_v32, %v597_v55 }
 0x205   :  { %v712_v58 = vmax.f32 %v606_v54, 0.0 }
 0x206   :  { %v710_v59 = vmax.f32 %v598_v57, 0.0 }
 0x207   :  { %v740_v60 = vpack.c.bf16 %v712_v58, %v711_v53 }
 0x208   :  { %v739_v61 = vpack.c.bf16 %v710_v59, %v709_v56  ;;  %v2213_v62 = vpop.f32.mrb[8].mxu1 }
 0x209   :  { %v619_v63 = vadd.f32 %v2213_v62, %v2812_v32  ;;  %v610_v0 = vpop.f32.mrb[9].mxu1 }
 0x20a   :  { %v611_v1 = vadd.f32 %v2812_v32, %v610_v0  ;;  %v2214_v2 = vpop.f32.mrb[10].mxu1  ;;  %2255 = vmatprep.mubr.bf16.mxu0 %v739_v61 }
 0x20b   :  { %v715_v3 = vmax.f32 %v619_v63, 0.0  ;;  %v622_v4 = vadd.f32 %v2214_v2, %v2812_v32  ;;  %v613_v5 = vpop.f32.mrb[11].mxu1  ;;  %2256 = vmatmul.mubr.bf16.gmra.mrb[36].mxu0 %v740_v60 }
 0x20c   :  { %v713_v6 = vmax.f32 %v611_v1, 0.0  ;;  %v614_v7 = vadd.f32 %v2812_v32, %v613_v5 }
 0x20d   :  { %v716_v8 = vmax.f32 %v622_v4, 0.0 }
 0x20e   :  { %v714_v9 = vmax.f32 %v614_v7, 0.0 }
 0x20f   :  { %v742_v10 = vpack.c.bf16 %v716_v8, %v715_v3 }
 0x210   :  { %v741_v11 = vpack.c.bf16 %v714_v9, %v713_v6  ;;  %v2217_v12 = vpop.f32.mrb[12].mxu1 }
 0x211   :  { %v635_v13 = vadd.f32 %v2217_v12, %v2812_v32  ;;  %v626_v14 = vpop.f32.mrb[13].mxu1 }
 0x212   :  { %v627_v15 = vadd.f32 %v2812_v32, %v626_v14  ;;  %v2218_v16 = vpop.f32.mrb[14].mxu1  ;;  %2259 = vmatprep.mubr.bf16.mxu0 %v741_v11 }
 0x213   :  { %v719_v17 = vmax.f32 %v635_v13, 0.0  ;;  %v638_v18 = vadd.f32 %v2218_v16, %v2812_v32  ;;  %v629_v19 = vpop.f32.mrb[15].mxu1  ;;  %2260 = vmatmul.mubr.bf16.gmra.mrb[40].mxu0 %v742_v10 }
 0x214   :  { %v717_v20 = vmax.f32 %v627_v15, 0.0  ;;  %v630_v21 = vadd.f32 %v2812_v32, %v629_v19  ;;  %v2388_v19 = vld [vmem:[#allocation5 + $0x38] sm:$0xff]  }
 0x215   :  { %v720_v22 = vmax.f32 %v638_v18, 0.0  ;;  %2297 = vmatprep.subr.bf16.mxu1 %v2388_v19 }
 0x216   :  { %v718_v23 = vmax.f32 %v630_v21, 0.0  ;;  %2298 = vmatpush3.bf16.msra.mxu1 %v2388_v19  ;;  %v1621_v21 = vld [vmem:[%s3728_s9 + $0x8] sm:$0xff] }
 0x217   :  { %v744_v24 = vpack.c.bf16 %v720_v22, %v719_v17  ;;  %v1623_v22 = vld [vmem:[%s3728_s9 + $0x18] sm:$0xff] }
 0x218   :  { %v743_v25 = vpack.c.bf16 %v718_v23, %v717_v20  ;;  %v2221_v26 = vpop.f32.mrb[16].mxu1  ;;  %v2593_v20 = vmov 0   ;;  %v1624_v23 = vld [vmem:[%s3728_s9 + $0x20] sm:$0xff] }
 0x219   :  { %v651_v27 = vadd.f32 %v2221_v26, %v2812_v32  ;;  %v642_v28 = vpop.f32.mrb[17].mxu1  ;;  %2340 = vset.pattern.permute.xlu1 %v2593_v20  ;;  %2339 = vset.pattern.permute.xlu0 %v2593_v20  ;;  %v1627_v26 = vld [vmem:[%s3728_s9 + $0x38] sm:$0xff] }
 0x21a   :  { %v643_v29 = vadd.f32 %v2812_v32, %v642_v28  ;;  %v2222_v39 = vpop.f32.mrb[18].mxu1  ;;  %2263 = vmatprep.mubr.bf16.mxu0 %v743_v25  ;;  %1656 = vperm.xlu1 %2340, %v1621_v21   ;;  %v1626_v25 = vld [vmem:[%s3728_s9 + $0x30] sm:$0xff] }
 0x21b   :  { %v723_v30 = vmax.f32 %v651_v27, 0.0  ;;  %v654_v31 = vadd.f32 %v2222_v39, %v2812_v32  ;;  %v645_v33 = vpop.f32.mrb[19].mxu1  ;;  %2264 = vmatmul.mubr.bf16.gmra.mrb[44].mxu0 %v744_v24  ;;  %v1625_v24 = vld [vmem:[%s3728_s9 + $0x28] sm:$0xff]  ;;  %v1628_v27 = vld [vmem:[%s3728_s9 + $0x40] sm:$0xff]  ;;  %v1630_v28 = vld [vmem:[%s3728_s9 + $0x50] sm:$0xff] }
 0x21c   :  { %v721_v34 = vmax.f32 %v643_v29, 0.0  ;;  %v646_v35 = vadd.f32 %v2812_v32, %v645_v33  ;;  %v1620_v29 = vld [vmem:[%s3728_s9] sm:$0xff]  ;;  %v1631_v33 = vld [vmem:[%s3728_s9 + $0x58] sm:$0xff] }
 0x21d   :  { %v724_v36 = vmax.f32 %v654_v31, 0.0  ;;  %1653 = vperm.xlu0 %2339, %v1620_v29   ;;  %v1632_v39 = vld [vmem:[%s3728_s9 + $0x60] sm:$0xff]  ;;  %v1634_v31 = vld [vmem:[%s3728_s9 + $0x70] sm:$0xff] }
 0x21e   :  { %v722_v37 = vmax.f32 %v646_v35, 0.0  ;;  %v1633_v35 = vld [vmem:[%s3728_s9 + $0x68] sm:$0xff] }
 0x21f   :  { %v746_v38 = vpack.c.bf16 %v724_v36, %v723_v30  ;;  %v1629_v30 = vld [vmem:[%s3728_s9 + $0x48] sm:$0xff]  ;;  %v1638_v36 = vld [vmem:[%s3728_s9 + $0x90] sm:$0xff] }
 0x220   :  { %v745_v40 = vpack.c.bf16 %v722_v37, %v721_v34  ;;  %v2225_v41 = vpop.f32.mrb[20].mxu1  ;;  %v1636_v34 = vld [vmem:[%s3728_s9 + $0x80] sm:$0xff]  ;;  %v1635_v37 = vld [vmem:[%s3728_s9 + $0x78] sm:$0xff] }
 0x221   :  { %v667_v42 = vadd.f32 %v2225_v41, %v2812_v32  ;;  %v658_v43 = vpop.f32.mrb[21].mxu1  ;;  %1680 = vperm.xlu0 %2339, %v1629_v30   ;;  %v1642_v41 = vld [vmem:[%s3728_s9 + $0xb0] sm:$0xff] }
 0x222   :  { %v659_v44 = vadd.f32 %v2812_v32, %v658_v43  ;;  %v2226_v45 = vpop.f32.mrb[22].mxu1  ;;  %2267 = vmatprep.mubr.bf16.mxu0 %v745_v40  ;;  %v1637_v40 = vld [vmem:[%s3728_s9 + $0x88] sm:$0xff]  ;;  %v1644_v43 = vld [vmem:[%s3728_s9 + $0xc0] sm:$0xff] }
 0x223   :  { %v727_v46 = vmax.f32 %v667_v42, 0.0  ;;  %v670_v47 = vadd.f32 %v2226_v45, %v2812_v32  ;;  %v661_v48 = vpop.f32.mrb[23].mxu1  ;;  %2268 = vmatmul.mubr.bf16.gmra.mrb[48].mxu0 %v746_v38  ;;  %v1640_v38 = vld [vmem:[%s3728_s9 + $0xa0] sm:$0xff]  ;;  %v1639_v42 = vld [vmem:[%s3728_s9 + $0x98] sm:$0xff]  ;;  %v1646_v45 = vld [vmem:[%s3728_s9 + $0xd0] sm:$0xff] }
 0x224   :  { %v725_v49 = vmax.f32 %v659_v44, 0.0  ;;  %v662_v50 = vadd.f32 %v2812_v32, %v661_v48  ;;  %v1641_v44 = vld [vmem:[%s3728_s9 + $0xa8] sm:$0xff] }
 0x225   :  { %v728_v51 = vmax.f32 %v670_v47, 0.0  ;;  %1686 = vperm.xlu0 %2339, %v1631_v33   ;;  %v1648_v47 = vld [vmem:[%s3728_s9 + $0xe0] sm:$0xff]  ;;  %v1645_v48 = vld [vmem:[%s3728_s9 + $0xc8] sm:$0xff] }
 0x226   :  { %v726_v52 = vmax.f32 %v662_v50, 0.0  ;;  %v1647_v50 = vld [vmem:[%s3728_s9 + $0xd8] sm:$0xff] }
 0x227   :  { %v748_v53 = vpack.c.bf16 %v728_v51, %v727_v46  ;;  %v1643_v46 = vld [vmem:[%s3728_s9 + $0xb8] sm:$0xff]  ;;  %v1649_v51 = vld [vmem:[%s3728_s9 + $0xe8] sm:$0xff] }
 0x228   :  { %v747_v54 = vpack.c.bf16 %v726_v52, %v725_v49  ;;  %v2229_v55 = vpop.f32.mrb[24].mxu1  ;;  %v1650_v49 = vld [vmem:[%s3728_s9 + $0xf0] sm:$0xff]  ;;  %v1651_v52 = vld [vmem:[%s3728_s9 + $0xf8] sm:$0xff] }
 0x229   :  { %v683_v56 = vadd.f32 %v2229_v55, %v2812_v32  ;;  %v674_v57 = vpop.f32.mrb[25].mxu1  ;;  %1692 = vperm.xlu0 %2339, %v1633_v35  }
 0x22a   :  { %v675_v58 = vadd.f32 %v2812_v32, %v674_v57  ;;  %v2230_v59 = vpop.f32.mrb[26].mxu1  ;;  %2271 = vmatprep.mubr.bf16.mxu0 %v747_v54 }
 0x22b   :  { %v731_v60 = vmax.f32 %v683_v56, 0.0  ;;  %v686_v61 = vadd.f32 %v2230_v59, %v2812_v32  ;;  %v677_v62 = vpop.f32.mrb[27].mxu1  ;;  %2272 = vmatmul.mubr.bf16.gmra.mrb[52].mxu0 %v748_v53  ;;  %v2945_v53 = vld [vmem:[%s3725_s6] ss:$0 sm:$0xff] }
 0x22c   :  { %v729_v63 = vmax.f32 %v675_v58, 0.0  ;;  %v678_v0 = vadd.f32 %v2812_v32, %v677_v62 }
 0x22d   :  { %v732_v1 = vmax.f32 %v686_v61, 0.0  ;;  %1698 = vperm.xlu0 %2339, %v1635_v37  }
 0x22e   :  { %v730_v2 = vmax.f32 %v678_v0, 0.0 }
 0x22f   :  { %v750_v3 = vpack.c.bf16 %v732_v1, %v731_v60 }
 0x230   :  { %v749_v4 = vpack.c.bf16 %v730_v2, %v729_v63  ;;  %v2233_v5 = vpop.f32.mrb[28].mxu1 }
 0x231   :  { %v699_v6 = vadd.f32 %v2233_v5, %v2812_v32  ;;  %v690_v7 = vpop.f32.mrb[29].mxu1  ;;  %1704 = vperm.xlu0 %2339, %v1637_v40  }
 0x232   :  { %v691_v8 = vadd.f32 %v2812_v32, %v690_v7  ;;  %v2234_v9 = vpop.f32.mrb[30].mxu1  ;;  %2275 = vmatprep.mubr.bf16.mxu0 %v749_v4 }
 0x233   :  { %v735_v10 = vmax.f32 %v699_v6, 0.0  ;;  %v702_v11 = vadd.f32 %v2234_v9, %v2812_v32  ;;  %v693_v12 = vpop.f32.mrb[31].mxu1  ;;  %2276 = vmatmul.mubr.bf16.gmra.mrb[56].mxu0 %v750_v3 }
 0x234   :  { %v733_v13 = vmax.f32 %v691_v8, 0.0  ;;  %v694_v14 = vadd.f32 %v2812_v32, %v693_v12  ;;  %v1622_v32 = vld [vmem:[%s3728_s9 + $0x10] sm:$0xff] }
 0x235   :  { %v736_v15 = vmax.f32 %v702_v11, 0.0  ;;  %1659 = vperm.xlu1 %2340, %v1622_v32   ;;  %1710 = vperm.xlu0 %2339, %v1639_v42  }
 0x236   :  { %v734_v16 = vmax.f32 %v694_v14, 0.0 }
 0x237   :  { %v752_v17 = vpack.c.bf16 %v736_v15, %v735_v10 }
 0x238   :  { %v751_v18 = vpack.c.bf16 %v734_v16, %v733_v13 }
 0x239   :  { %1662 = vperm.xlu1 %2340, %v1623_v22   ;;  %1716 = vperm.xlu0 %2339, %v1641_v44  }
 0x23a   :  { %2279 = vmatprep.mubr.bf16.mxu0 %v751_v18 }
 0x23b   :  { %2280 = vmatmul.mubr.bf16.gmra.mrb[60].mxu0 %v752_v17 }
 0x23d   :  { %1665 = vperm.xlu1 %2340, %v1624_v23   ;;  %1722 = vperm.xlu0 %2339, %v1643_v46  }
 0x241   :  { %1668 = vperm.xlu1 %2340, %v1625_v24   ;;  %1728 = vperm.xlu0 %2339, %v1645_v48  }
 0x245   :  { %1671 = vperm.xlu1 %2340, %v1626_v25   ;;  %1734 = vperm.xlu0 %2339, %v1647_v50  }
 0x249   :  { %1674 = vperm.xlu1 %2340, %v1627_v26   ;;  %1740 = vperm.xlu0 %2339, %v1649_v51  }
 0x24d   :  { %1677 = vperm.xlu1 %2340, %v1628_v27   ;;  %1746 = vperm.xlu0 %2339, %v1651_v52  }
 0x251   :  { %1683 = vperm.xlu1 %2340, %v1630_v28  }
 0x255   :  { %1689 = vperm.xlu1 %2340, %v1632_v39  }
 0x259   :  { %1695 = vperm.xlu1 %2340, %v1634_v31  }
 0x25d   :  { %1701 = vperm.xlu1 %2340, %v1636_v34  }
 0x261   :  { %1707 = vperm.xlu1 %2340, %v1638_v36  }
 0x265   :  { %1713 = vperm.xlu1 %2340, %v1640_v38  }
 0x269   :  { %1719 = vperm.xlu1 %2340, %v1642_v41  }
 0x26d   :  { %1725 = vperm.xlu1 %2340, %v1644_v43  }
 0x271   :  { %1731 = vperm.xlu1 %2340, %v1646_v45  }
 0x275   :  { %1737 = vperm.xlu1 %2340, %v1648_v47  }
 0x279   :  { %1743 = vperm.xlu1 %2340, %v1650_v49  }
 0x2d6   :  { %v2253_v54 = vpop.f32.mrb[32].mxu0 }
 0x2d7   :  { %v867_v55 = vadd.f32 %v2253_v54, %v2945_v53  ;;  %v858_v56 = vpop.f32.mrb[33].mxu0 }
 0x2d8   :  { %v859_v57 = vadd.f32 %v2945_v53, %v858_v56  ;;  %v2254_v58 = vpop.f32.mrb[34].mxu0 }
 0x2d9   :  { %v870_v59 = vadd.f32 %v2254_v58, %v2945_v53  ;;  %v861_v60 = vpop.f32.mrb[35].mxu0  ;;  %v987_v62 = vmax.f32 %v867_v55, 0.0 }
 0x2da   :  { %v862_v61 = vadd.f32 %v2945_v53, %v861_v60  ;;  %v985_v0 = vmax.f32 %v859_v57, 0.0 }
 0x2db   :  { %v988_v63 = vmax.f32 %v870_v59, 0.0 }
 0x2dc   :  { %v986_v1 = vmax.f32 %v862_v61, 0.0 }
 0x2dd   :  { %v1018_v2 = vpack.c.bf16 %v988_v63, %v987_v62 }
 0x2de   :  { %v1017_v3 = vpack.c.bf16 %v986_v1, %v985_v0  ;;  %v2257_v4 = vpop.f32.mrb[36].mxu0 }
 0x2df   :  { %v883_v5 = vadd.f32 %v2257_v4, %v2945_v53  ;;  %v874_v6 = vpop.f32.mrb[37].mxu0 }
 0x2e0   :  { %v875_v7 = vadd.f32 %v2945_v53, %v874_v6  ;;  %v2258_v8 = vpop.f32.mrb[38].mxu0  ;;  %2299 = vmatprep.mubr.bf16.mxu1 %v1017_v3 }
 0x2e1   :  { %v886_v9 = vadd.f32 %v2258_v8, %v2945_v53  ;;  %v877_v10 = vpop.f32.mrb[39].mxu0  ;;  %2300 = vmatmul.mubr.bf16.vlgmr.msra.gmra.mrb[32].mxu1 %v1018_v2  ;;  %v991_v12 = vmax.f32 %v883_v5, 0.0 }
 0x2e2   :  { %v878_v11 = vadd.f32 %v2945_v53, %v877_v10  ;;  %v989_v14 = vmax.f32 %v875_v7, 0.0 }
 0x2e3   :  { %v992_v13 = vmax.f32 %v886_v9, 0.0 }
 0x2e4   :  { %v990_v15 = vmax.f32 %v878_v11, 0.0 }
 0x2e5   :  { %v1020_v16 = vpack.c.bf16 %v992_v13, %v991_v12 }
 0x2e6   :  { %v1019_v17 = vpack.c.bf16 %v990_v15, %v989_v14  ;;  %v2261_v18 = vpop.f32.mrb[40].mxu0 }
 0x2e7   :  { %v899_v19 = vadd.f32 %v2261_v18, %v2945_v53  ;;  %v890_v20 = vpop.f32.mrb[41].mxu0 }
 0x2e8   :  { %v891_v21 = vadd.f32 %v2945_v53, %v890_v20  ;;  %v2262_v32 = vpop.f32.mrb[42].mxu0  ;;  %2303 = vmatprep.mubr.bf16.mxu1 %v1019_v17 }
 0x2e9   :  { %v995_v22 = vmax.f32 %v899_v19, 0.0  ;;  %v902_v23 = vadd.f32 %v2262_v32, %v2945_v53  ;;  %v893_v24 = vpop.f32.mrb[43].mxu0  ;;  %2304 = vmatmul.mubr.bf16.gmra.mrb[36].mxu1 %v1020_v16 }
 0x2ea   :  { %v993_v25 = vmax.f32 %v891_v21, 0.0  ;;  %v894_v26 = vadd.f32 %v2945_v53, %v893_v24 }
 0x2eb   :  { %v996_v27 = vmax.f32 %v902_v23, 0.0 }
 0x2ec   :  { %v994_v28 = vmax.f32 %v894_v26, 0.0 }
 0x2ed   :  { %v1022_v29 = vpack.c.bf16 %v996_v27, %v995_v22 }
 0x2ee   :  { %v1021_v39 = vpack.c.bf16 %v994_v28, %v993_v25  ;;  %v2265_v30 = vpop.f32.mrb[44].mxu0 }
 0x2ef   :  { %v915_v31 = vadd.f32 %v2265_v30, %v2945_v53  ;;  %v906_v33 = vpop.f32.mrb[45].mxu0 }
 0x2f0   :  { %v907_v34 = vadd.f32 %v2945_v53, %v906_v33  ;;  %v2266_v35 = vpop.f32.mrb[46].mxu0  ;;  %2307 = vmatprep.mubr.bf16.mxu1 %v1021_v39 }
 0x2f1   :  { %v999_v36 = vmax.f32 %v915_v31, 0.0  ;;  %v918_v37 = vadd.f32 %v2266_v35, %v2945_v53  ;;  %v909_v38 = vpop.f32.mrb[47].mxu0  ;;  %2308 = vmatmul.mubr.bf16.gmra.mrb[40].mxu1 %v1022_v29 }
 0x2f2   :  { %v997_v40 = vmax.f32 %v907_v34, 0.0  ;;  %v910_v41 = vadd.f32 %v2945_v53, %v909_v38  ;;  %v1657_v38 = vpop.permute.xlu1 %1656 }
 0x2f3   :  { %v1000_v42 = vmax.f32 %v918_v37, 0.0 }
 0x2f4   :  { %v998_v43 = vmax.f32 %v910_v41, 0.0  ;;  %v1265_v41 = vlaneseq }
 0x2f5   :  { %v1024_v44 = vpack.c.bf16 %v1000_v42, %v999_v36 }
 0x2f6   :  { %v1023_v45 = vpack.c.bf16 %v998_v43, %v997_v40  ;;  %v2269_v46 = vpop.f32.mrb[48].mxu0  ;;  %v1660_v40 = vpop.permute.xlu1 %1659  ;;  %v2979_v43 = vand.u32 127, %v1265_v41 }
 0x2f7   :  { %v931_v47 = vadd.f32 %v2269_v46, %v2945_v53  ;;  %v922_v48 = vpop.f32.mrb[49].mxu0 }
 0x2f8   :  { %v923_v49 = vadd.f32 %v2945_v53, %v922_v48  ;;  %v2270_v50 = vpop.f32.mrb[50].mxu0  ;;  %2311 = vmatprep.mubr.bf16.mxu1 %v1023_v45  ;;  %vm1267_vm0 = vcmp.lt.s32.totalorder %v2979_v43, 8  ;;  %vm1750_vm1 = vcmp.eq.s32.totalorder %v2979_v43, %v1660_v40  ;;  %vm1749_vm4 = vcmp.eq.s32.totalorder %v2979_v43, %v1657_v38 }
 0x2f9   :  { %v1003_v51 = vmax.f32 %v931_v47, 0.0  ;;  %v934_v52 = vadd.f32 %v2270_v50, %v2945_v53  ;;  %v925_v54 = vpop.f32.mrb[51].mxu0  ;;  %2312 = vmatmul.mubr.bf16.gmra.mrb[44].mxu1 %v1024_v44  ;;  %v2984_v44 = vld [vmem:[%s3727_s8] ss:$0 sm:$0xff]  ;;  %s2594_s8 = smov [#allocation7]  }
 0x2fa   :  { %v1001_v55 = vmax.f32 %v923_v49, 0.0  ;;  %v926_v56 = vadd.f32 %v2945_v53, %v925_v54  ;;  %v1663_v42 = vpop.permute.xlu1 %1662  ;;  %v1654_v49 = vpop.permute.xlu0 %1653  ;;  %s1978_s23 = sshll.u32 %s2594_s8, 4  ;;  %s1979_s23 = int_to_ptr.vmem [resolvable:$true] %s1978_s23 }
 0x2fb   :  { %v1004_v57 = vmax.f32 %v934_v52, 0.0  ;;  %vm1748_vm2 = vcmp.eq.s32.totalorder %v2979_v43, %v1654_v49  ;;  %vm1751_vm3 = vcmp.eq.s32.totalorder %v2979_v43, %v1663_v42  ;;  %s2561_s24 = scalar_lea.vmem %s1979_s23, 4096  ;;  %p2566_p3 = scmp.lt.s32.totalorder %s1979_s23, %s1979_s23 }
 0x2fc   :  { %v1002_v58 = vmax.f32 %v926_v56, 0.0  ;;  %p2562_p2 = scmp.ne.s32.totalorder %s1979_s23, %s2561_s24  ;;  %p2567_p4 = scmp.lt.s32.totalorder %s2561_s24, %s2561_s24 }
 0x2fd   :  { %v1026_v59 = vpack.c.bf16 %v1004_v57, %v1003_v51 }
 0x2fe   :  { %v1025_v60 = vpack.c.bf16 %v1002_v58, %v1001_v55  ;;  %v2273_v61 = vpop.f32.mrb[52].mxu0  ;;  %v2990_v47 = vpop.permute.xlu1 %1665  ;;  %p2568_p5 = por %p2567_p4, %p2566_p3 }
 0x2ff   :  { %v947_v62 = vadd.f32 %v2273_v61, %v2945_v53  ;;  %v938_v63 = vpop.f32.mrb[53].mxu0  ;;  %vm1752_vm8 = vcmp.eq.s32.totalorder %v2979_v43, %v2990_v47 }
 0x300   :  { %v939_v0 = vadd.f32 %v2945_v53, %v938_v63  ;;  %v2274_v1 = vpop.f32.mrb[54].mxu0  ;;  %2315 = vmatprep.mubr.bf16.mxu1 %v1025_v60  ;;  %p2569_p6 = pnand %p2568_p5, %p2562_p2 }
 0x301   :  { %v1007_v2 = vmax.f32 %v947_v62, 0.0  ;;  %v950_v3 = vadd.f32 %v2274_v1, %v2945_v53  ;;  %v941_v4 = vpop.f32.mrb[55].mxu0  ;;  %2316 = vmatmul.mubr.bf16.gmra.mrb[48].mxu1 %v1026_v59 }
 0x302   :  { %v1005_v5 = vmax.f32 %v939_v0, 0.0  ;;  %v942_v6 = vadd.f32 %v2945_v53, %v941_v4  ;;  %v1669_v60 = vpop.permute.xlu1 %1668 }
 0x303   :  { %v1008_v7 = vmax.f32 %v950_v3, 0.0  ;;  %vm1753_vm7 = vcmp.eq.s32.totalorder %v2979_v43, %v1669_v60 }
 0x304   :  { %v1006_v8 = vmax.f32 %v942_v6, 0.0 }
 0x305   :  { %v1028_v9 = vpack.c.bf16 %v1008_v7, %v1007_v2 }
 0x306   :  { %v1027_v10 = vpack.c.bf16 %v1006_v8, %v1005_v5  ;;  %v2277_v11 = vpop.f32.mrb[56].mxu0  ;;  %v1672_v2 = vpop.permute.xlu1 %1671 }
 0x307   :  { %v963_v12 = vadd.f32 %v2277_v11, %v2945_v53  ;;  %v954_v13 = vpop.f32.mrb[57].mxu0  ;;  %vm1754_vm6 = vcmp.eq.s32.totalorder %v2979_v43, %v1672_v2 }
 0x308   :  { %v955_v14 = vadd.f32 %v2945_v53, %v954_v13  ;;  %v2278_v15 = vpop.f32.mrb[58].mxu0  ;;  %2319 = vmatprep.mubr.bf16.mxu1 %v1027_v10 }
 0x309   :  { %v1011_v16 = vmax.f32 %v963_v12, 0.0  ;;  %v966_v17 = vadd.f32 %v2278_v15, %v2945_v53  ;;  %v957_v18 = vpop.f32.mrb[59].mxu0  ;;  %2320 = vmatmul.mubr.bf16.gmra.mrb[52].mxu1 %v1028_v9 }
 0x30a   :  { %v1009_v19 = vmax.f32 %v955_v14, 0.0  ;;  %v958_v20 = vadd.f32 %v2945_v53, %v957_v18  ;;  %v1675_v13 = vpop.permute.xlu1 %1674 }
 0x30b   :  { %v1012_v21 = vmax.f32 %v966_v17, 0.0  ;;  %vm1755_vm5 = vcmp.eq.s32.totalorder %v2979_v43, %v1675_v13 }
 0x30c   :  { %v1010_v32 = vmax.f32 %v958_v20, 0.0 }
 0x30d   :  { %v1030_v22 = vpack.c.bf16 %v1012_v21, %v1011_v16 }
 0x30e   :  { %v1029_v23 = vpack.c.bf16 %v1010_v32, %v1009_v19  ;;  %v2281_v24 = vpop.f32.mrb[60].mxu0 }
 0x30f   :  { %v979_v25 = vadd.f32 %v2281_v24, %v2945_v53  ;;  %v970_v26 = vpop.f32.mrb[61].mxu0  ;;  %v1681_v24 = vpop.permute.xlu0 %1680 }
 0x310   :  { %v971_v27 = vadd.f32 %v2945_v53, %v970_v26  ;;  %v2282_v28 = vpop.f32.mrb[62].mxu0  ;;  %2323 = vmatprep.mubr.bf16.mxu1 %v1029_v23  ;;  %v1678_v23 = vpop.permute.xlu1 %1677  ;;  %vm1757_vm11 = vcmp.eq.s32.totalorder %v2979_v43, %v1681_v24 }
 0x311   :  { %v1015_v29 = vmax.f32 %v979_v25, 0.0  ;;  %v982_v39 = vadd.f32 %v2282_v28, %v2945_v53  ;;  %v973_v30 = vpop.f32.mrb[63].mxu0  ;;  %2324 = vmatmul.mubr.bf16.gmra.mrb[56].mxu1 %v1030_v22  ;;  %vm1756_vm12 = vcmp.eq.s32.totalorder %v2979_v43, %v1678_v23 }
 0x312   :  { %v1013_v31 = vmax.f32 %v971_v27, 0.0  ;;  %v974_v33 = vadd.f32 %v2945_v53, %v973_v30 }
 0x313   :  { %v1016_v34 = vmax.f32 %v982_v39, 0.0 }
 0x314   :  { %v1014_v35 = vmax.f32 %v974_v33, 0.0 }
 0x315   :  { %v1032_v36 = vpack.c.bf16 %v1016_v34, %v1015_v29 }
 0x316   :  { %v1031_v37 = vpack.c.bf16 %v1014_v35, %v1013_v31  ;;  %v1684_v35 = vpop.permute.xlu1 %1683 }
 0x317   :  { %vm1758_vm10 = vcmp.eq.s32.totalorder %v2979_v43, %v1684_v35 }
 0x318   :  { %2327 = vmatprep.mubr.bf16.mxu1 %v1031_v37 }
 0x319   :  { %2328 = vmatmul.mubr.bf16.gmra.mrb[60].mxu1 %v1032_v36  ;;  %v1687_v36 = vpop.permute.xlu0 %1686 }
 0x31a   :  { %vm1759_vm9 = vcmp.eq.s32.totalorder %v2979_v43, %v1687_v36 }
 0x3b4   :  { %v2301_v45 = vpop.f32.mrb[32].mxu1 }
 0x3b5   :  { %v2988_v53 = vadd.f32 %v2301_v45, %v2984_v44  ;;  %v1138_v46 = vpop.f32.mrb[33].mxu1 }
 0x3b6   :  { %v2302_v48 = vpop.f32.mrb[34].mxu1  ;;  %v2994_v50 = vadd.f32 %v2984_v44, %v1138_v46 }
 0x3b7   :  { %v1141_v51 = vpop.f32.mrb[35].mxu1  ;;  %v1782_v52 = vsel %vm1750_vm1, %v2988_v53, 0.0  ;;  %v3000_v54 = vsel %vm1267_vm0, %v2988_v53, -1e+30  ;;  %v3005_v55 = vadd.f32 %v2302_v48, %v2984_v44 }
 0x3b8   :  { %3759 = vst [vmem:[#allocation11_spill] sm:$0xff] %v2994_v50  ;;  %1816 = vadd.xlane.f32.xlu0 %v1782_v52  ;;  %1304 = vmax.xlane.f32.xlu1 %v3000_v54  ;;  %v3008_v56 = vadd.f32 %v2984_v44, %v1141_v51  ;;  %v1780_v57 = vsel %vm1748_vm2, %v2994_v50, 0.0  ;;  %v3014_v58 = vsel %vm1267_vm0, %v2994_v50, -1e+30 }
 0x3b9   :  { %3760 = vst [vmem:[#allocation12_spill] sm:$0xff] %v3005_v55  ;;  %v3020_v0 = vsel %vm1267_vm0, %v3005_v55, -1e+30  ;;  %v1783_v5 = vsel %vm1751_vm3, %v3005_v55, 0.0 }
 0x3ba   :  { %3761 = vst [vmem:[#allocation13_spill] sm:$0xff] %v3008_v56  ;;  %v3025_v1 = vsel %vm1267_vm0, %v3008_v56, -1e+30  ;;  %v1781_v6 = vsel %vm1749_vm4, %v3008_v56, 0.0 }
 0x3bc   :  { %v2305_v59 = vpop.f32.mrb[36].mxu1  ;;  %1812 = vadd.xlane.f32.xlu1 %v1780_v57  ;;  %1300 = vmax.xlane.f32.xlu0 %v3014_v58 }
 0x3bd   :  { %v1154_v61 = vpop.f32.mrb[37].mxu1  ;;  %v3032_v3 = vadd.f32 %v2305_v59, %v2984_v44 }
 0x3be   :  { %v2306_v62 = vpop.f32.mrb[38].mxu1  ;;  %v3054_v14 = vadd.f32 %v2984_v44, %v1154_v61 }
 0x3bf   :  { %v1157_v63 = vpop.f32.mrb[39].mxu1  ;;  %3762 = vst [vmem:[#allocation14_spill] sm:$0xff] %v3032_v3  ;;  %v3035_v4 = vadd.f32 %v2306_v62, %v2984_v44  ;;  %v3047_v12 = vsel %vm1267_vm0, %v3032_v3, -1e+30  ;;  %v1786_v17 = vsel %vm1754_vm6, %v3032_v3, 0.0 }
 0x3c0   :  { %1306 = vmax.xlane.f32.xlu1 %v3020_v0  ;;  %1302 = vmax.xlane.f32.xlu0 %v3025_v1  ;;  %3764 = vst [vmem:[#allocation16_spill] sm:$0xff] %v3054_v14  ;;  %v3057_v15 = vadd.f32 %v2984_v44, %v1157_v63  ;;  %v3073_v22 = vsel %vm1267_vm0, %v3054_v14, -1e+30  ;;  %v1784_v27 = vsel %vm1752_vm8, %v3054_v14, 0.0 }
 0x3c1   :  { %3763 = vst [vmem:[#allocation15_spill] sm:$0xff] %v3035_v4  ;;  %v3042_v11 = vsel %vm1267_vm0, %v3035_v4, -1e+30  ;;  %v1787_v16 = vsel %vm1755_vm5, %v3035_v4, 0.0 }
 0x3c2   :  { %3765 = vst [vmem:[#allocation17_spill] sm:$0xff] %v3057_v15  ;;  %v3068_v32 = vsel %vm1267_vm0, %v3057_v15, -1e+30  ;;  %v1785_v26 = vsel %vm1753_vm7, %v3057_v15, 0.0 }
 0x3c4   :  { %v2309_v7 = vpop.f32.mrb[40].mxu1  ;;  %1818 = vadd.xlane.f32.xlu1 %v1783_v5  ;;  %1814 = vadd.xlane.f32.xlu0 %v1781_v6 }
 0x3c5   :  { %v1170_v8 = vpop.f32.mrb[41].mxu1  ;;  %v3086_v29 = vadd.f32 %v2309_v7, %v2984_v44 }
 0x3c6   :  { %v2310_v9 = vpop.f32.mrb[42].mxu1  ;;  %v3107_v37 = vadd.f32 %v2984_v44, %v1170_v8 }
 0x3c7   :  { %v1173_v10 = vpop.f32.mrb[43].mxu1  ;;  %v3081_v25 = vadd.f32 %v2310_v9, %v2984_v44  ;;  %3767 = vst [vmem:[#allocation19_spill] sm:$0xff] %v3086_v29  ;;  %v3100_v34 = vsel %vm1267_vm0, %v3086_v29, -1e+30  ;;  %v1790_v41 = vsel %vm1758_vm10, %v3086_v29, 0.0 }
 0x3c8   :  { %1314 = vmax.xlane.f32.xlu1 %v3042_v11  ;;  %1312 = vmax.xlane.f32.xlu0 %v3047_v12  ;;  %3768 = vst [vmem:[#allocation20_spill] sm:$0xff] %v3107_v37  ;;  %v3110_v38 = vadd.f32 %v2984_v44, %v1173_v10  ;;  %v3131_v57 = vsel %vm1267_vm0, %v3107_v37, -1e+30  ;;  %v1788_v61 = vsel %vm1756_vm12, %v3107_v37, 0.0 }
 0x3c9   :  { %3766 = vst [vmem:[#allocation18_spill] sm:$0xff] %v3081_v25  ;;  %v3095_v33 = vsel %vm1267_vm0, %v3081_v25, -1e+30  ;;  %v1791_v40 = vsel %vm1759_vm9, %v3081_v25, 0.0 }
 0x3ca   :  { %3769 = vst [vmem:[#allocation21_spill] sm:$0xff] %v3110_v38  ;;  %v3126_v52 = vsel %vm1267_vm0, %v3110_v38, -1e+30  ;;  %v1789_v60 = vsel %vm1757_vm11, %v3110_v38, 0.0 }
 0x3cc   :  { %v2313_v18 = vpop.f32.mrb[44].mxu1  ;;  %1826 = vadd.xlane.f32.xlu1 %v1787_v16  ;;  %1824 = vadd.xlane.f32.xlu0 %v1786_v17 }
 0x3cd   :  { %v3061_v19 = vpop.f32.mrb[45].mxu1  ;;  %v3143_v63 = vadd.f32 %v2313_v18, %v2984_v44 }
 0x3ce   :  { %v2314_v20 = vpop.f32.mrb[46].mxu1  ;;  %v3174_v18 = vadd.f32 %v2984_v44, %v3061_v19 }
 0x3cf   :  { %v3063_v21 = vpop.f32.mrb[47].mxu1  ;;  %3774 = vst [vmem:[#allocation26_spill] sm:$0xff] %v3143_v63  ;;  %v3146_v2 = vadd.f32 %v2314_v20, %v2984_v44  ;;  %v3165_v16 = vsel %vm1267_vm0, %v3143_v63, -1e+30 }
 0x3d0   :  { %1310 = vmax.xlane.f32.xlu1 %v3068_v32  ;;  %1308 = vmax.xlane.f32.xlu0 %v3073_v22  ;;  %3776 = vst [vmem:[#allocation28_spill] sm:$0xff] %v3174_v18  ;;  %v3178_v20 = vadd.f32 %v2984_v44, %v3063_v21  ;;  %v3188_v24 = vsel %vm1267_vm0, %v3174_v18, -1e+30 }
 0x3d1   :  { %3775 = vst [vmem:[#allocation27_spill] sm:$0xff] %v3146_v2  ;;  %v3160_v13 = vsel %vm1267_vm0, %v3146_v2, -1e+30 }
 0x3d2   :  { %3777 = vst [vmem:[#allocation29_spill] sm:$0xff] %v3178_v20  ;;  %v3183_v23 = vsel %vm1267_vm0, %v3178_v20, -1e+30 }
 0x3d4   :  { %v2317_v28 = vpop.f32.mrb[48].mxu1  ;;  %1822 = vadd.xlane.f32.xlu1 %v1785_v26  ;;  %1820 = vadd.xlane.f32.xlu0 %v1784_v27 }
 0x3d5   :  { %v3088_v39 = vpop.f32.mrb[49].mxu1  ;;  %v3193_v19 = vadd.f32 %v2317_v28, %v2984_v44 }
 0x3d6   :  { %v2318_v30 = vpop.f32.mrb[50].mxu1 }
 0x3d7   :  { %v3090_v31 = vpop.f32.mrb[51].mxu1  ;;  %3778 = vst [vmem:[#allocation30_spill] sm:$0xff] %v3193_v19  ;;  %v3196_v21 = vadd.f32 %v2318_v30, %v2984_v44  ;;  %v3215_v30 = vsel %vm1267_vm0, %v3193_v19, -1e+30 }
 0x3d8   :  { %1322 = vmax.xlane.f32.xlu1 %v3095_v33  ;;  %1320 = vmax.xlane.f32.xlu0 %v3100_v34 }
 0x3d9   :  { %3779 = vst [vmem:[#allocation31_spill] sm:$0xff] %v3196_v21  ;;  %v3210_v28 = vsel %vm1267_vm0, %v3196_v21, -1e+30 }
 0x3dc   :  { %v2321_v42 = vpop.f32.mrb[52].mxu1  ;;  %1834 = vadd.xlane.f32.xlu1 %v1791_v40  ;;  %1832 = vadd.xlane.f32.xlu0 %v1790_v41 }
 0x3dd   :  { %v3115_v45 = vadd.f32 %v2321_v42, %v2984_v44  ;;  %v1218_v46 = vpop.f32.mrb[53].mxu1 }
 0x3de   :  { %v3118_v47 = vadd.f32 %v2984_v44, %v1218_v46  ;;  %v2322_v48 = vpop.f32.mrb[54].mxu1 }
 0x3df   :  { %3770 = vst [vmem:[#allocation22_spill] sm:$0xff] %v3115_v45  ;;  %v3121_v49 = vadd.f32 %v2322_v48, %v2984_v44  ;;  %v1221_v51 = vpop.f32.mrb[55].mxu1  ;;  %v3224_v48 = vadd.f32 %v2984_v44, %v3088_v39 }
 0x3e0   :  { %3771 = vst [vmem:[#allocation23_spill] sm:$0xff] %v3118_v47  ;;  %v3134_v59 = vadd.f32 %v2984_v44, %v1221_v51  ;;  %1318 = vmax.xlane.f32.xlu1 %v3126_v52  ;;  %1316 = vmax.xlane.f32.xlu0 %v3131_v57  ;;  %v3228_v51 = vadd.f32 %v2984_v44, %v3090_v31 }
 0x3e1   :  { %3772 = vst [vmem:[#allocation24_spill] sm:$0xff] %v3121_v49  ;;  %3783 = vst [vmem:[#allocation35_spill] sm:$0xff] %v3224_v48  ;;  %v3245_v39 = vsel %vm1267_vm0, %v3121_v49, -1e+30 }
 0x3e2   :  { %3773 = vst [vmem:[#allocation25_spill] sm:$0xff] %v3134_v59  ;;  %3784 = vst [vmem:[#allocation36_spill] sm:$0xff] %v3228_v51  ;;  %v3257_v31 = vsel %vm1267_vm0, %v3134_v59, -1e+30 }
 0x3e4   :  { %v2325_v62 = vpop.f32.mrb[56].mxu1  ;;  %1830 = vadd.xlane.f32.xlu1 %v1789_v60  ;;  %1828 = vadd.xlane.f32.xlu0 %v1788_v61  ;;  %v3233_v60 = vsel %vm1267_vm0, %v3228_v51, -1e+30  ;;  %v3238_v61 = vsel %vm1267_vm0, %v3224_v48, -1e+30 }
 0x3e5   :  { %v3149_v5 = vadd.f32 %v2325_v62, %v2984_v44  ;;  %v1234_v6 = vpop.f32.mrb[57].mxu1  ;;  %v3262_v62 = vsel %vm1267_vm0, %v3118_v47, -1e+30 }
 0x3e6   :  { %v3152_v7 = vadd.f32 %v2984_v44, %v1234_v6  ;;  %v2326_v8 = vpop.f32.mrb[58].mxu1 }
 0x3e7   :  { %v3155_v9 = vadd.f32 %v2326_v8, %v2984_v44  ;;  %v1237_v10 = vpop.f32.mrb[59].mxu1  ;;  %v3274_v8 = vsel %vm1267_vm0, %v3149_v5, -1e+30 }
 0x3e8   :  { %v3168_v17 = vadd.f32 %v2984_v44, %v1237_v10  ;;  %1330 = vmax.xlane.f32.xlu1 %v3160_v13  ;;  %1328 = vmax.xlane.f32.xlu0 %v3165_v16  ;;  %v1690_v10 = vpop.permute.xlu1 %1689 }
 0x3e9   :  { %v3269_v6 = vsel %vm1267_vm0, %v3155_v9, -1e+30  ;;  %vm1760_vm14 = vcmp.eq.s32.totalorder %v2979_v43, %v1690_v10 }
 0x3ea   :  { %v1792_v56 = vsel %vm1760_vm14, %v3174_v18, 0.0 }
 0x3ec   :  { %v2329_v26 = vpop.f32.mrb[60].mxu1  ;;  %1326 = vmax.xlane.f32.xlu1 %v3183_v23  ;;  %1324 = vmax.xlane.f32.xlu0 %v3188_v24  ;;  %v1696_v38 = vpop.permute.xlu1 %1695 }
 0x3ed   :  { %v3199_v27 = vadd.f32 %v2329_v26, %v2984_v44  ;;  %v1250_v35 = vpop.f32.mrb[61].mxu1  ;;  %v1693_v26 = vpop.permute.xlu0 %1692 }
 0x3ee   :  { %v3202_v36 = vadd.f32 %v2984_v44, %v1250_v35  ;;  %v2330_v40 = vpop.f32.mrb[62].mxu1  ;;  %v3281_v35 = vsel %vm1267_vm0, %v3168_v17, -1e+30  ;;  %vm1761_vm13 = vcmp.eq.s32.totalorder %v2979_v43, %v1693_v26 }
 0x3ef   :  { %3780 = vst [vmem:[#allocation32_spill] sm:$0xff] %v3199_v27  ;;  %v3205_v41 = vadd.f32 %v2330_v40, %v2984_v44  ;;  %v1253_v42 = vpop.f32.mrb[63].mxu1  ;;  %v3286_v40 = vsel %vm1267_vm0, %v3152_v7, -1e+30  ;;  %v3298_v37 = vsel %vm1267_vm0, %v3199_v27, -1e+30 }
 0x3f0   :  { %3781 = vst [vmem:[#allocation33_spill] sm:$0xff] %v3202_v36  ;;  %v3218_v46 = vadd.f32 %v2984_v44, %v1253_v42  ;;  %1338 = vmax.xlane.f32.xlu1 %v3210_v28  ;;  %1336 = vmax.xlane.f32.xlu0 %v3215_v30  ;;  %v3250_v44 = vsel %vm1267_vm0, %v3115_v45, -1e+30  ;;  %v3310_v14 = vsel %vm1267_vm0, %v3202_v36, -1e+30  ;;  %v1702_v15 = vpop.permute.xlu1 %1701  ;;  %v1793_v4 = vsel %vm1761_vm13, %v3178_v20, 0.0 }
 0x3f1   :  { %3782 = vst [vmem:[#allocation34_spill] sm:$0xff] %v3205_v41  ;;  %v3293_v42 = vsel %vm1267_vm0, %v3205_v41, -1e+30  ;;  %v1699_v29 = vpop.permute.xlu0 %1698  ;;  %vm1764_vm2 = vcmp.eq.s32.totalorder %v2979_v43, %v1702_v15 }
 0x3f2   :  { %v3305_v25 = vsel %vm1267_vm0, %v3218_v46, -1e+30  ;;  %vm1763_vm15 = vcmp.eq.s32.totalorder %v2979_v43, %v1699_v29  ;;  %vm1762_vm0 = vcmp.eq.s32.totalorder %v2979_v43, %v1696_v38 }
 0x3f3   :  { %v1795_v55 = vsel %vm1763_vm15, %v3146_v2, 0.0  ;;  %v1794_v50 = vsel %vm1762_vm0, %v3143_v63, 0.0 }
 0x3f4   :  { %1334 = vmax.xlane.f32.xlu1 %v3233_v60  ;;  %1332 = vmax.xlane.f32.xlu0 %v3238_v61  ;;  %v1708_v26 = vpop.permute.xlu1 %1707 }
 0x3f5   :  { %v1705_v3 = vpop.permute.xlu0 %1704  ;;  %vm1766_vm4 = vcmp.eq.s32.totalorder %v2979_v43, %v1708_v26 }
 0x3f6   :  { %vm1765_vm1 = vcmp.eq.s32.totalorder %v2979_v43, %v1705_v3 }
 0x3f7   :  { %v1797_v18 = vsel %vm1765_vm1, %v3228_v51, 0.0  ;;  %vm1908_vm1 = vcmp.eq.s32.totalorder %v2979_v43, 127 }
 0x3f8   :  { %1346 = vmax.xlane.f32.xlu1 %v3245_v39  ;;  %1344 = vmax.xlane.f32.xlu0 %v3250_v44 }
 0x3f9   :  { %v1711_v10 = vpop.permute.xlu0 %1710 }
 0x3fa   :  { %vm1767_vm3 = vcmp.eq.s32.totalorder %v2979_v43, %v1711_v10 }
 0x3fc   :  { %1342 = vmax.xlane.f32.xlu1 %v3257_v31  ;;  %1340 = vmax.xlane.f32.xlu0 %v3262_v62 }
 0x3fd   :  { %v1717_v29 = vpop.permute.xlu0 %1716 }
 0x3fe   :  { %vm1769_vm5 = vcmp.eq.s32.totalorder %v2979_v43, %v1717_v29 }
 0x3ff   :  { %v1801_v3 = vsel %vm1769_vm5, %v3134_v59, 0.0 }
 0x400   :  { %1354 = vmax.xlane.f32.xlu1 %v3269_v6  ;;  %1352 = vmax.xlane.f32.xlu0 %v3274_v8 }
 0x404   :  { %1350 = vmax.xlane.f32.xlu1 %v3281_v35  ;;  %1348 = vmax.xlane.f32.xlu0 %v3286_v40 }
 0x408   :  { %1362 = vmax.xlane.f32.xlu1 %v3293_v42  ;;  %1360 = vmax.xlane.f32.xlu0 %v3298_v37 }
 0x40c   :  { %1358 = vmax.xlane.f32.xlu1 %v3305_v25  ;;  %1356 = vmax.xlane.f32.xlu0 %v3310_v14 }
 0x410   :  { %1838 = vadd.xlane.f32.xlu1 %v1793_v4  ;;  %1836 = vadd.xlane.f32.xlu0 %v1792_v56  ;;  %v1796_v56 = vsel %vm1764_vm2, %v3224_v48, 0.0  ;;  %v1714_v4 = vpop.permute.xlu1 %1713 }
 0x411   :  { %vm1768_vm6 = vcmp.eq.s32.totalorder %v2979_v43, %v1714_v4 }
 0x412   :  { %v1800_v15 = vsel %vm1768_vm6, %v3118_v47, 0.0 }
 0x414   :  { %1842 = vadd.xlane.f32.xlu1 %v1795_v55  ;;  %1840 = vadd.xlane.f32.xlu0 %v1794_v50  ;;  %v1799_v50 = vsel %vm1767_vm3, %v3196_v21, 0.0  ;;  %v1798_v55 = vsel %vm1766_vm4, %v3193_v19, 0.0  ;;  %v1720_v38 = vpop.permute.xlu1 %1719 }
 0x415   :  { %vm1770_vm8 = vcmp.eq.s32.totalorder %v2979_v43, %v1720_v38 }
 0x416   :  { %v1802_v10 = vsel %vm1770_vm8, %v3115_v45, 0.0 }
 0x418   :  { %1846 = vadd.xlane.f32.xlu1 %v1797_v18  ;;  %1844 = vadd.xlane.f32.xlu0 %v1796_v56  ;;  %v1723_v18 = vpop.permute.xlu0 %1722  ;;  %v3338_v56 = vpop.permute.xlu1 %1725 }
 0x419   :  { %vm1771_vm7 = vcmp.eq.s32.totalorder %v2979_v43, %v1723_v18  ;;  %vm1772_vm10 = vcmp.eq.s32.totalorder %v2979_v43, %v3338_v56 }
 0x41a   :  { %v1803_v26 = vsel %vm1771_vm7, %v3121_v49, 0.0 }
 0x41c   :  { %1850 = vadd.xlane.f32.xlu1 %v1799_v50  ;;  %1848 = vadd.xlane.f32.xlu0 %v1798_v55  ;;  %v3340_v4 = vpop.permute.xlu0 %1728  ;;  %v3342_v29 = vpop.permute.xlu1 %1731 }
 0x41d   :  { %vm1773_vm9 = vcmp.eq.s32.totalorder %v2979_v43, %v3340_v4  ;;  %vm1774_vm12 = vcmp.eq.s32.totalorder %v2979_v43, %v3342_v29 }
 0x41e   :  { %v1806_v4 = vsel %vm1774_vm12, %v3149_v5, 0.0 }
 0x420   :  { %1854 = vadd.xlane.f32.xlu1 %v1801_v3  ;;  %1852 = vadd.xlane.f32.xlu0 %v1800_v15  ;;  %v3344_v50 = vpop.permute.xlu0 %1734  ;;  %v3346_v55 = vpop.permute.xlu1 %1737 }
 0x421   :  { %vm1775_vm11 = vcmp.eq.s32.totalorder %v2979_v43, %v3344_v50  ;;  %vm1776_vm14 = vcmp.eq.s32.totalorder %v2979_v43, %v3346_v55 }
 0x422   :  { %v1808_v50 = vsel %vm1776_vm14, %v3202_v36, 0.0 }
 0x424   :  { %1858 = vadd.xlane.f32.xlu1 %v1803_v26  ;;  %1856 = vadd.xlane.f32.xlu0 %v1802_v10  ;;  %v3348_v3 = vpop.permute.xlu0 %1740  ;;  %v3350_v15 = vpop.permute.xlu1 %1743 }
 0x425   :  { %vm1777_vm13 = vcmp.eq.s32.totalorder %v2979_v43, %v3348_v3  ;;  %vm1778_vm0 = vcmp.eq.s32.totalorder %v2979_v43, %v3350_v15 }
 0x426   :  { %v1809_v56 = vsel %vm1777_vm13, %v3218_v46, 0.0  ;;  %v1810_v3 = vsel %vm1778_vm0, %v3199_v27, 0.0 }
 0x428   :  { %v3352_v38 = vpop.permute.xlu0 %1746 }
 0x429   :  { %vm1779_vm15 = vcmp.eq.s32.totalorder %v2979_v43, %v3352_v38 }
 0x42a   :  { %v1811_v29 = vsel %vm1779_vm15, %v3205_v41, 0.0 }
 0x445   :  { %v3354_v18 = vpop.xlane.xlu0 %1816  ;;  %v3356_v26 = vpop.xlane.xlu1 %1304 }
 0x446   :  { %v1366_v10 = vsub.f32 %v3000_v54, %v3356_v26 }
 0x448   :  { %v1400_v47 = vmul.f32 1.442695, %v1366_v10 }
 0x449   :  { %v3360_v59 = vpop.xlane.xlu1 %1812  ;;  %v3362_v45 = vpop.xlane.xlu0 %1300 }
 0x44a   :  { %2389 = vpow2.f32 %v1400_v47  ;;  %v1364_v49 = vsub.f32 %v3014_v58, %v3362_v45 }
 0x44c   :  { %v1396_v48 = vmul.f32 1.442695, %v1364_v49 }
 0x44d   :  { %v3366_v51 = vpop.xlane.xlu1 %1306  ;;  %v3368_v19 = vpop.xlane.xlu0 %1302 }
 0x44e   :  { %3785 = vst [vmem:[#allocation37_spill] sm:$0xff] %v3368_v19  ;;  %2391 = vpow2.f32 %v1396_v48  ;;  %v1367_v21 = vsub.f32 %v3020_v0, %v3366_v51  ;;  %v1365_v54 = vsub.f32 %v3025_v1, %v3368_v19 }
 0x450   :  { %v1402_v10 = vmul.f32 1.442695, %v1367_v21  ;;  %v1398_v47 = vmul.f32 1.442695, %v1365_v54 }
 0x451   :  { %v3374_v20 = vpop.xlane.xlu1 %1818  ;;  %v3376_v63 = vpop.xlane.xlu0 %1814 }
 0x452   :  { %3786 = vst [vmem:[#allocation38_spill] sm:$0xff] %v3374_v20  ;;  %2393 = vpow2.f32 %v1402_v10 }
 0x453   :  { %2395 = vpow2.f32 %v1398_v47 }
 0x454   :  { %v2390_v58 = vpop.eup %2389 }
 0x455   :  { %v3378_v49 = vpop.xlane.xlu1 %1314  ;;  %1464 = vadd.xlane.f32.xlu0 %v2390_v58  ;;  %v3380_v2 = vpop.xlane.xlu0 %1312 }
 0x456   :  { %3787 = vst [vmem:[#allocation39_spill] sm:$0xff] %v3380_v2  ;;  %v1371_v0 = vsub.f32 %v3042_v11, %v3378_v49  ;;  %v1370_v1 = vsub.f32 %v3047_v12, %v3380_v2 }
 0x458   :  { %v2392_v21 = vpop.eup %2391  ;;  %v1410_v48 = vmul.f32 1.442695, %v1371_v0  ;;  %v1408_v19 = vmul.f32 1.442695, %v1370_v1 }
 0x459   :  { %v3386_v20 = vpop.xlane.xlu1 %1826  ;;  %1460 = vadd.xlane.f32.xlu0 %v2392_v21  ;;  %v3388_v54 = vpop.xlane.xlu0 %1824 }
 0x45a   :  { %3788 = vst [vmem:[#allocation40_spill] sm:$0xff] %v3386_v20  ;;  %3789 = vst [vmem:[#allocation41_spill] sm:$0xff] %v3388_v54  ;;  %2397 = vpow2.f32 %v1410_v48 }
 0x45b   :  { %2399 = vpow2.f32 %v1408_v19 }
 0x45c   :  { %v2394_v10 = vpop.eup %2393 }
 0x45d   :  { %1466 = vadd.xlane.f32.xlu1 %v2394_v10  ;;  %v3390_v58 = vpop.xlane.xlu1 %1310  ;;  %v3392_v47 = vpop.xlane.xlu0 %1308 }
 0x45e   :  { %v1369_v11 = vsub.f32 %v3068_v32, %v3390_v58  ;;  %v1368_v12 = vsub.f32 %v3073_v22, %v3392_v47  ;;  %v2396_v0 = vpop.eup %2395 }
 0x460   :  { %v1406_v1 = vmul.f32 1.442695, %v1369_v11  ;;  %v1404_v20 = vmul.f32 1.442695, %v1368_v12 }
 0x461   :  { %v3398_v21 = vpop.xlane.xlu1 %1822  ;;  %1462 = vadd.xlane.f32.xlu1 %v2396_v0  ;;  %v3400_v48 = vpop.xlane.xlu0 %1820 }
 0x462   :  { %3790 = vst [vmem:[#allocation42_spill] sm:$0xff] %v3398_v21  ;;  %3791 = vst [vmem:[#allocation43_spill] sm:$0xff] %v3400_v48  ;;  %2401 = vpow2.f32 %v1406_v1 }
 0x463   :  { %2403 = vpow2.f32 %v1404_v20 }
 0x464   :  { %v2398_v19 = vpop.eup %2397 }
 0x465   :  { %v2400_v10 = vpop.eup %2399  ;;  %v3402_v54 = vpop.xlane.xlu1 %1322  ;;  %1474 = vadd.xlane.f32.xlu1 %v2398_v19 }
 0x466   :  { %v3404_v2 = vpop.xlane.xlu0 %1320  ;;  %v1375_v32 = vsub.f32 %v3095_v33, %v3402_v54  ;;  %1472 = vadd.xlane.f32.xlu0 %v2400_v10 }
 0x467   :  { %v1374_v22 = vsub.f32 %v3100_v34, %v3404_v2 }
 0x468   :  { %v1418_v11 = vmul.f32 1.442695, %v1375_v32 }
 0x469   :  { %v1416_v12 = vmul.f32 1.442695, %v1374_v22  ;;  %v3410_v0 = vpop.xlane.xlu1 %1834 }
 0x46a   :  { %3792 = vst [vmem:[#allocation44_spill] sm:$0xff] %v3410_v0  ;;  %v3412_v1 = vpop.xlane.xlu0 %1832  ;;  %2405 = vpow2.f32 %v1418_v11 }
 0x46b   :  { %3793 = vst [vmem:[#allocation45_spill] sm:$0xff] %v3412_v1  ;;  %2407 = vpow2.f32 %v1416_v12 }
 0x46c   :  { %v2402_v20 = vpop.eup %2401 }
 0x46d   :  { %v2404_v48 = vpop.eup %2403  ;;  %v3414_v19 = vpop.xlane.xlu1 %1318  ;;  %1470 = vadd.xlane.f32.xlu1 %v2402_v20 }
 0x46e   :  { %v3416_v21 = vpop.xlane.xlu0 %1316  ;;  %v1373_v33 = vsub.f32 %v3126_v52, %v3414_v19  ;;  %1468 = vadd.xlane.f32.xlu0 %v2404_v48 }
 0x46f   :  { %v1372_v34 = vsub.f32 %v3131_v57, %v3416_v21 }
 0x470   :  { %v1414_v10 = vmul.f32 1.442695, %v1373_v33 }
 0x471   :  { %v1412_v32 = vmul.f32 1.442695, %v1372_v34  ;;  %v3422_v22 = vpop.xlane.xlu1 %1830 }
 0x472   :  { %3794 = vst [vmem:[#allocation46_spill] sm:$0xff] %v3422_v22  ;;  %v3424_v11 = vpop.xlane.xlu0 %1828  ;;  %2409 = vpow2.f32 %v1414_v10 }
 0x473   :  { %3795 = vst [vmem:[#allocation47_spill] sm:$0xff] %v3424_v11  ;;  %2411 = vpow2.f32 %v1412_v32 }
 0x474   :  { %v2406_v12 = vpop.eup %2405 }
 0x475   :  { %v2408_v1 = vpop.eup %2407  ;;  %v3426_v20 = vpop.xlane.xlu1 %1330  ;;  %1482 = vadd.xlane.f32.xlu1 %v2406_v12 }
 0x476   :  { %3796 = vst [vmem:[#allocation48_spill] sm:$0xff] %v3426_v20  ;;  %v3428_v0 = vpop.xlane.xlu0 %1328  ;;  %v1379_v52 = vsub.f32 %v3160_v13, %v3426_v20  ;;  %1480 = vadd.xlane.f32.xlu0 %v2408_v1 }
 0x477   :  { %v1378_v57 = vsub.f32 %v3165_v16, %v3428_v0 }
 0x478   :  { %v1426_v48 = vmul.f32 1.442695, %v1379_v52 }
 0x479   :  { %v1424_v33 = vmul.f32 1.442695, %v1378_v57  ;;  %v3434_v34 = vpop.xlane.xlu1 %1326 }
 0x47a   :  { %v3436_v10 = vpop.xlane.xlu0 %1324  ;;  %2413 = vpow2.f32 %v1426_v48  ;;  %v1377_v32 = vsub.f32 %v3183_v23, %v3434_v34 }
 0x47b   :  { %v1376_v12 = vsub.f32 %v3188_v24, %v3436_v10  ;;  %2415 = vpow2.f32 %v1424_v33 }
 0x47c   :  { %v2410_v11 = vpop.eup %2409  ;;  %v1422_v13 = vmul.f32 1.442695, %v1377_v32 }
 0x47d   :  { %v1420_v1 = vmul.f32 1.442695, %v1376_v12  ;;  %v2412_v20 = vpop.eup %2411  ;;  %v3442_v22 = vpop.xlane.xlu1 %1338  ;;  %1478 = vadd.xlane.f32.xlu1 %v2410_v11 }
 0x47e   :  { %v3444_v16 = vpop.xlane.xlu0 %1336  ;;  %2417 = vpow2.f32 %v1422_v13  ;;  %v1383_v52 = vsub.f32 %v3210_v28, %v3442_v22  ;;  %1476 = vadd.xlane.f32.xlu0 %v2412_v20 }
 0x47f   :  { %v1382_v23 = vsub.f32 %v3215_v30, %v3444_v16  ;;  %2419 = vpow2.f32 %v1420_v1 }
 0x480   :  { %v1434_v24 = vmul.f32 1.442695, %v1383_v52 }
 0x481   :  { %v1432_v57 = vmul.f32 1.442695, %v1382_v23  ;;  %v3450_v48 = vpop.xlane.xlu1 %1334 }
 0x482   :  { %v3452_v33 = vpop.xlane.xlu0 %1332  ;;  %2421 = vpow2.f32 %v1434_v24  ;;  %v1381_v11 = vsub.f32 %v3233_v60, %v3450_v48 }
 0x483   :  { %v1380_v32 = vsub.f32 %v3238_v61, %v3452_v33  ;;  %2423 = vpow2.f32 %v1432_v57 }
 0x484   :  { %v2414_v28 = vpop.eup %2413  ;;  %v1430_v20 = vmul.f32 1.442695, %v1381_v11 }
 0x485   :  { %v1428_v12 = vmul.f32 1.442695, %v1380_v32  ;;  %v2416_v13 = vpop.eup %2415  ;;  %v3458_v30 = vpop.xlane.xlu1 %1346  ;;  %1490 = vadd.xlane.f32.xlu1 %v2414_v28 }
 0x486   :  { %v3460_v1 = vpop.xlane.xlu0 %1344  ;;  %2425 = vpow2.f32 %v1430_v20  ;;  %v1387_v52 = vsub.f32 %v3245_v39, %v3458_v30  ;;  %1488 = vadd.xlane.f32.xlu0 %v2416_v13 }
 0x487   :  { %v1386_v60 = vsub.f32 %v3250_v44, %v3460_v1  ;;  %2427 = vpow2.f32 %v1428_v12 }
 0x488   :  { %v2418_v61 = vpop.eup %2417  ;;  %v1442_v23 = vmul.f32 1.442695, %v1387_v52 }
 0x489   :  { %v1440_v24 = vmul.f32 1.442695, %v1386_v60  ;;  %v2420_v57 = vpop.eup %2419  ;;  %v3466_v11 = vpop.xlane.xlu1 %1342  ;;  %1486 = vadd.xlane.f32.xlu1 %v2418_v61 }
 0x48a   :  { %v3468_v32 = vpop.xlane.xlu0 %1340  ;;  %2429 = vpow2.f32 %v1442_v23  ;;  %v1385_v28 = vsub.f32 %v3257_v31, %v3466_v11  ;;  %1484 = vadd.xlane.f32.xlu0 %v2420_v57 }
 0x48b   :  { %v1384_v39 = vsub.f32 %v3262_v62, %v3468_v32  ;;  %2431 = vpow2.f32 %v1440_v24 }
 0x48c   :  { %v2422_v44 = vpop.eup %2421  ;;  %v1438_v20 = vmul.f32 1.442695, %v1385_v28 }
 0x48d   :  { %v1436_v12 = vmul.f32 1.442695, %v1384_v39  ;;  %v2424_v13 = vpop.eup %2423  ;;  %v3474_v52 = vpop.xlane.xlu1 %1354  ;;  %1498 = vadd.xlane.f32.xlu1 %v2422_v44 }
 0x48e   :  { %v3476_v60 = vpop.xlane.xlu0 %1352  ;;  %2433 = vpow2.f32 %v1438_v20  ;;  %v1391_v61 = vsub.f32 %v3269_v6, %v3474_v52  ;;  %1496 = vadd.xlane.f32.xlu0 %v2424_v13 }
 0x48f   :  { %v1390_v31 = vsub.f32 %v3274_v8, %v3476_v60  ;;  %2435 = vpow2.f32 %v1436_v12 }
 0x490   :  { %v2426_v62 = vpop.eup %2425  ;;  %v1450_v23 = vmul.f32 1.442695, %v1391_v61 }
 0x491   :  { %v1448_v24 = vmul.f32 1.442695, %v1390_v31  ;;  %v2428_v57 = vpop.eup %2427  ;;  %v3482_v28 = vpop.xlane.xlu1 %1350  ;;  %1494 = vadd.xlane.f32.xlu1 %v2426_v62 }
 0x492   :  { %v3484_v39 = vpop.xlane.xlu0 %1348  ;;  %2437 = vpow2.f32 %v1450_v23  ;;  %v1389_v44 = vsub.f32 %v3281_v35, %v3482_v28  ;;  %1492 = vadd.xlane.f32.xlu0 %v2428_v57 }
 0x493   :  { %v1388_v6 = vsub.f32 %v3286_v40, %v3484_v39  ;;  %2439 = vpow2.f32 %v1448_v24 }
 0x494   :  { %v2430_v8 = vpop.eup %2429  ;;  %v1446_v20 = vmul.f32 1.442695, %v1389_v44 }
 0x495   :  { %v1444_v12 = vmul.f32 1.442695, %v1388_v6  ;;  %v2432_v13 = vpop.eup %2431  ;;  %v3490_v61 = vpop.xlane.xlu1 %1362  ;;  %1506 = vadd.xlane.f32.xlu1 %v2430_v8 }
 0x496   :  { %v3492_v31 = vpop.xlane.xlu0 %1360  ;;  %2441 = vpow2.f32 %v1446_v20  ;;  %v1395_v62 = vsub.f32 %v3293_v42, %v3490_v61  ;;  %1504 = vadd.xlane.f32.xlu0 %v2432_v13 }
 0x497   :  { %v1394_v35 = vsub.f32 %v3298_v37, %v3492_v31  ;;  %2443 = vpow2.f32 %v1444_v12 }
 0x498   :  { %v2434_v40 = vpop.eup %2433  ;;  %v1458_v23 = vmul.f32 1.442695, %v1395_v62 }
 0x499   :  { %v1456_v24 = vmul.f32 1.442695, %v1394_v35  ;;  %v2436_v57 = vpop.eup %2435  ;;  %v3498_v44 = vpop.xlane.xlu1 %1358  ;;  %1502 = vadd.xlane.f32.xlu1 %v2434_v40 }
 0x49a   :  { %v3500_v6 = vpop.xlane.xlu0 %1356  ;;  %2445 = vpow2.f32 %v1458_v23  ;;  %v1393_v8 = vsub.f32 %v3305_v25, %v3498_v44  ;;  %1500 = vadd.xlane.f32.xlu0 %v2436_v57 }
 0x49b   :  { %v1392_v42 = vsub.f32 %v3310_v14, %v3500_v6  ;;  %2447 = vpow2.f32 %v1456_v24  ;;  %v1805_v14 = vsel %vm1773_vm9, %v3168_v17, 0.0  ;;  %v1804_v24 = vsel %vm1772_vm10, %v3152_v7, 0.0 }
 0x49c   :  { %v2438_v37 = vpop.eup %2437  ;;  %v1454_v20 = vmul.f32 1.442695, %v1393_v8  ;;  %v1807_v8 = vsel %vm1775_vm11, %v3155_v9, 0.0 }
 0x49d   :  { %v1452_v12 = vmul.f32 1.442695, %v1392_v42  ;;  %v2440_v13 = vpop.eup %2439  ;;  %1514 = vadd.xlane.f32.xlu1 %v2438_v37  ;;  %v3534_v37 = vpop.xlane.xlu1 %1838 }
 0x49e   :  { %2449 = vpow2.f32 %v1454_v20  ;;  %1512 = vadd.xlane.f32.xlu0 %v2440_v13  ;;  %v3530_v42 = vpop.xlane.xlu0 %1836 }
 0x49f   :  { %2451 = vpow2.f32 %v1452_v12 }
 0x4a0   :  { %v2442_v62 = vpop.eup %2441 }
 0x4a1   :  { %v2444_v35 = vpop.eup %2443  ;;  %1510 = vadd.xlane.f32.xlu1 %v2442_v62  ;;  %v3538_v12 = vpop.xlane.xlu1 %1842 }
 0x4a2   :  { %1508 = vadd.xlane.f32.xlu0 %v2444_v35  ;;  %v3532_v55 = vpop.xlane.xlu0 %1840 }
 0x4a4   :  { %v2446_v40 = vpop.eup %2445 }
 0x4a5   :  { %v2448_v23 = vpop.eup %2447  ;;  %1522 = vadd.xlane.f32.xlu1 %v2446_v40  ;;  %v3542_v13 = vpop.xlane.xlu1 %1846 }
 0x4a6   :  { %1520 = vadd.xlane.f32.xlu0 %v2448_v23  ;;  %v3536_v20 = vpop.xlane.xlu0 %1844 }
 0x4a8   :  { %v2450_v25 = vpop.eup %2449 }
 0x4a9   :  { %v2452_v57 = vpop.eup %2451  ;;  %1518 = vadd.xlane.f32.xlu1 %v2450_v25  ;;  %v3546_v62 = vpop.xlane.xlu1 %1850 }
 0x4aa   :  { %1516 = vadd.xlane.f32.xlu0 %v2452_v57  ;;  %v3540_v38 = vpop.xlane.xlu0 %1848 }
 0x4ad   :  { %1862 = vadd.xlane.f32.xlu1 %v1805_v14  ;;  %v3550_v40 = vpop.xlane.xlu1 %1854 }
 0x4ae   :  { %1860 = vadd.xlane.f32.xlu0 %v1804_v24  ;;  %v3544_v15 = vpop.xlane.xlu0 %1852 }
 0x4b1   :  { %1866 = vadd.xlane.f32.xlu1 %v1807_v8  ;;  %v3552_v25 = vpop.xlane.xlu1 %1858 }
 0x4b2   :  { %1864 = vadd.xlane.f32.xlu0 %v1806_v4  ;;  %v3548_v35 = vpop.xlane.xlu0 %1856 }
 0x4b5   :  { %1870 = vadd.xlane.f32.xlu1 %v1809_v56 }
 0x4b6   :  { %1868 = vadd.xlane.f32.xlu0 %v1808_v50 }
 0x4b9   :  { %1874 = vadd.xlane.f32.xlu1 %v1811_v29 }
 0x4ba   :  { %1872 = vadd.xlane.f32.xlu0 %v1810_v3 }
 0x4e2   :  { %v1465_v23 = vpop.xlane.xlu0 %1464 }
 0x4e3   :  { %2453 = vlog2.f32 %v1465_v23 }
 0x4e6   :  { %v1461_v57 = vpop.xlane.xlu0 %1460 }
 0x4e7   :  { %2455 = vlog2.f32 %v1461_v57 }
 0x4ea   :  { %v1467_v14 = vpop.xlane.xlu1 %1466 }
 0x4eb   :  { %2457 = vlog2.f32 %v1467_v14 }
 0x4ed   :  { %v2454_v24 = vpop.eup %2453 }
 0x4ee   :  { %v1529_v8 = vmul.f32 0.6931472, %v2454_v24  ;;  %v1463_v4 = vpop.xlane.xlu1 %1462 }
 0x4ef   :  { %2459 = vlog2.f32 %v1463_v4  ;;  %v3797_v4 = vld [vmem:[#allocation11_spill] sm:$0xff] }
 0x4f0   :  { %v1590_v56 = vadd.f32 %v1529_v8, %v3356_v26 }
 0x4f1   :  { %v2456_v50 = vpop.eup %2455 }
 0x4f2   :  { %v1878_v29 = vsub.f32 %v1590_v56, %v3354_v18  ;;  %v1525_v3 = vmul.f32 0.6931472, %v2456_v50  ;;  %v1475_v27 = vpop.xlane.xlu1 %1474  ;;  %v3798_v50 = vld [vmem:[#allocation38_spill] sm:$0xff] }
 0x4f3   :  { %2461 = vlog2.f32 %v1475_v27  ;;  %v1473_v23 = vpop.xlane.xlu0 %1472 }
 0x4f4   :  { %v1911_v57 = vsel %vm1908_vm1, %v1878_v29, %v2988_v53  ;;  %v1588_v14 = vadd.f32 %v1525_v3, %v3362_v45  ;;  %2463 = vlog2.f32 %v1473_v23  ;;  %v3799_v29 = vld [vmem:[#allocation12_spill] sm:$0xff] }
 0x4f5   :  { %v2458_v24 = vpop.eup %2457  ;;  %1943 = vst [vmem:[#allocation7 + $0x10] sm:$0xff] %v1911_v57 }
 0x4f6   :  { %v1876_v26 = vsub.f32 %v1588_v14, %v3360_v59  ;;  %v1531_v8 = vmul.f32 0.6931472, %v2458_v24  ;;  %v3800_v59 = vld [vmem:[#allocation37_spill] sm:$0xff] }
 0x4f8   :  { %v1909_v18 = vsel %vm1908_vm1, %v1876_v26, %v3797_v4  ;;  %v1591_v56 = vadd.f32 %v1531_v8, %v3366_v51  ;;  %v3801_v8 = vld [vmem:[#allocation13_spill] sm:$0xff] }
 0x4f9   :  { %v2460_v27 = vpop.eup %2459  ;;  %1941 = vst [vmem:[#allocation7] sm:$0xff] %v1909_v18 }
 0x4fa   :  { %v1879_v41 = vsub.f32 %v1591_v56, %v3798_v50  ;;  %v1527_v36 = vmul.f32 0.6931472, %v2460_v27  ;;  %v1471_v53 = vpop.xlane.xlu1 %1470  ;;  %v3802_v56 = vld [vmem:[#allocation39_spill] sm:$0xff] }
 0x4fb   :  { %2465 = vlog2.f32 %v1471_v53  ;;  %v1469_v45 = vpop.xlane.xlu0 %1468  ;;  %v3804_v53 = vld [vmem:[#allocation41_spill] sm:$0xff] }
 0x4fc   :  { %v1912_v3 = vsel %vm1908_vm1, %v1879_v41, %v3799_v29  ;;  %v1589_v23 = vadd.f32 %v1527_v36, %v3800_v59  ;;  %2467 = vlog2.f32 %v1469_v45  ;;  %v3803_v41 = vld [vmem:[#allocation40_spill] sm:$0xff] }
 0x4fd   :  { %v2462_v57 = vpop.eup %2461  ;;  %1944 = vst [vmem:[#allocation7 + $0x18] sm:$0xff] %v1912_v3  ;;  %v3805_v3 = vld [vmem:[#allocation15_spill] sm:$0xff] }
 0x4fe   :  { %v2464_v14 = vpop.eup %2463  ;;  %v1877_v51 = vsub.f32 %v1589_v23, %v3376_v63  ;;  %v1539_v24 = vmul.f32 0.6931472, %v2462_v57  ;;  %v3806_v23 = vld [vmem:[#allocation14_spill] sm:$0xff] }
 0x4ff   :  { %v1537_v26 = vmul.f32 0.6931472, %v2464_v14 }
 0x500   :  { %v1910_v4 = vsel %vm1908_vm1, %v1877_v51, %v3801_v8  ;;  %v1595_v18 = vadd.f32 %v1539_v24, %v3378_v49  ;;  %v3807_v8 = vld [vmem:[#allocation42_spill] sm:$0xff] }
 0x501   :  { %1942 = vst [vmem:[#allocation7 + $0x8] sm:$0xff] %v1910_v4  ;;  %v1594_v27 = vadd.f32 %v1537_v26, %v3802_v56  ;;  %v3808_v56 = vld [vmem:[#allocation43_spill] sm:$0xff] }
 0x502   :  { %v1883_v50 = vsub.f32 %v1595_v18, %v3803_v41  ;;  %v1483_v36 = vpop.xlane.xlu1 %1482 }
 0x503   :  { %v1882_v45 = vsub.f32 %v1594_v27, %v3804_v53  ;;  %2469 = vlog2.f32 %v1483_v36  ;;  %v1481_v29 = vpop.xlane.xlu0 %1480 }
 0x504   :  { %v1916_v63 = vsel %vm1908_vm1, %v1883_v50, %v3805_v3  ;;  %2471 = vlog2.f32 %v1481_v29  ;;  %v3809_v50 = vld [vmem:[#allocation17_spill] sm:$0xff] }
 0x505   :  { %v2466_v59 = vpop.eup %2465  ;;  %1948 = vst [vmem:[#allocation7 + $0x38] sm:$0xff] %v1916_v63  ;;  %v1915_v49 = vsel %vm1908_vm1, %v1882_v45, %v3806_v23  ;;  %v3810_v45 = vld [vmem:[#allocation16_spill] sm:$0xff] }
 0x506   :  { %v2468_v57 = vpop.eup %2467  ;;  %1947 = vst [vmem:[#allocation7 + $0x30] sm:$0xff] %v1915_v49  ;;  %v1535_v14 = vmul.f32 0.6931472, %v2466_v59  ;;  %v3811_v23 = vld [vmem:[#allocation44_spill] sm:$0xff] }
 0x507   :  { %v1533_v51 = vmul.f32 0.6931472, %v2468_v57 }
 0x508   :  { %v1593_v24 = vadd.f32 %v1535_v14, %v3390_v58  ;;  %v3812_v14 = vld [vmem:[#allocation45_spill] sm:$0xff] }
 0x509   :  { %v1592_v26 = vadd.f32 %v1533_v51, %v3392_v47 }
 0x50a   :  { %v1881_v4 = vsub.f32 %v1593_v24, %v3807_v8  ;;  %v1479_v18 = vpop.xlane.xlu1 %1478 }
 0x50b   :  { %v1880_v27 = vsub.f32 %v1592_v26, %v3808_v56  ;;  %2473 = vlog2.f32 %v1479_v18  ;;  %v1477_v41 = vpop.xlane.xlu0 %1476  ;;  %v3813_v26 = vld [vmem:[#allocation18_spill] sm:$0xff]  ;;  %v3814_v18 = vld [vmem:[#allocation19_spill] sm:$0xff] }
 0x50c   :  { %v1914_v36 = vsel %vm1908_vm1, %v1881_v4, %v3809_v50  ;;  %2475 = vlog2.f32 %v1477_v41 }
 0x50d   :  { %v2470_v53 = vpop.eup %2469  ;;  %1946 = vst [vmem:[#allocation7 + $0x28] sm:$0xff] %v1914_v36  ;;  %v1913_v58 = vsel %vm1908_vm1, %v1880_v27, %v3810_v45  ;;  %v3815_v45 = vld [vmem:[#allocation46_spill] sm:$0xff] }
 0x50e   :  { %v2472_v29 = vpop.eup %2471  ;;  %1945 = vst [vmem:[#allocation7 + $0x20] sm:$0xff] %v1913_v58  ;;  %v1547_v47 = vmul.f32 0.6931472, %v2470_v53 }
 0x50f   :  { %v1545_v3 = vmul.f32 0.6931472, %v2472_v29 }
 0x510   :  { %v1599_v63 = vadd.f32 %v1547_v47, %v3402_v54  ;;  %v3816_v47 = vld [vmem:[#allocation47_spill] sm:$0xff] }
 0x511   :  { %v1598_v59 = vadd.f32 %v1545_v3, %v3404_v2 }
 0x512   :  { %v1887_v49 = vsub.f32 %v1599_v63, %v3811_v23  ;;  %v1491_v57 = vpop.xlane.xlu1 %1490 }
 0x513   :  { %v1886_v51 = vsub.f32 %v1598_v59, %v3812_v14  ;;  %2477 = vlog2.f32 %v1491_v57  ;;  %v1489_v24 = vpop.xlane.xlu0 %1488  ;;  %v3817_v59 = vld [vmem:[#allocation21_spill] sm:$0xff]  ;;  %v3818_v57 = vld [vmem:[#allocation20_spill] sm:$0xff] }
 0x514   :  { %v1920_v8 = vsel %vm1908_vm1, %v1887_v49, %v3813_v26  ;;  %2479 = vlog2.f32 %v1489_v24 }
 0x515   :  { %v2474_v4 = vpop.eup %2473  ;;  %1952 = vst [vmem:[#allocation7 + $0x58] sm:$0xff] %v1920_v8  ;;  %v1919_v54 = vsel %vm1908_vm1, %v1886_v51, %v3814_v18  ;;  %v3819_v8 = vld [vmem:[#allocation48_spill] sm:$0xff] }
 0x516   :  { %v2476_v56 = vpop.eup %2475  ;;  %1951 = vst [vmem:[#allocation7 + $0x50] sm:$0xff] %v1919_v54  ;;  %v1543_v2 = vmul.f32 0.6931472, %v2474_v4  ;;  %v1487_v27 = vpop.xlane.xlu1 %1486 }
 0x517   :  { %v1541_v41 = vmul.f32 0.6931472, %v2476_v56  ;;  %2481 = vlog2.f32 %v1487_v27  ;;  %v1485_v50 = vpop.xlane.xlu0 %1484 }
 0x518   :  { %v1597_v36 = vadd.f32 %v1543_v2, %v3414_v19  ;;  %2483 = vlog2.f32 %v1485_v50 }
 0x519   :  { %v1596_v53 = vadd.f32 %v1541_v41, %v3416_v21 }
 0x51a   :  { %v1885_v58 = vsub.f32 %v1597_v36, %v3815_v45  ;;  %v1499_v29 = vpop.xlane.xlu1 %1498  ;;  %v3820_v45 = vld [vmem:[#allocation27_spill] sm:$0xff] }
 0x51b   :  { %v1884_v3 = vsub.f32 %v1596_v53, %v3816_v47  ;;  %2485 = vlog2.f32 %v1499_v29  ;;  %v1497_v63 = vpop.xlane.xlu0 %1496 }
 0x51c   :  { %v1918_v23 = vsel %vm1908_vm1, %v1885_v58, %v3817_v59  ;;  %2487 = vlog2.f32 %v1497_v63 }
 0x51d   :  { %v2478_v49 = vpop.eup %2477  ;;  %1950 = vst [vmem:[#allocation7 + $0x48] sm:$0xff] %v1918_v23  ;;  %v1917_v19 = vsel %vm1908_vm1, %v1884_v3, %v3818_v57 }
 0x51e   :  { %v2480_v14 = vpop.eup %2479  ;;  %1949 = vst [vmem:[#allocation7 + $0x40] sm:$0xff] %v1917_v19  ;;  %v1555_v21 = vmul.f32 0.6931472, %v2478_v49  ;;  %v1495_v51 = vpop.xlane.xlu1 %1494  ;;  %v3822_v19 = vld [vmem:[#allocation29_spill] sm:$0xff] }
 0x51f   :  { %v1553_v24 = vmul.f32 0.6931472, %v2480_v14  ;;  %2489 = vlog2.f32 %v1495_v51  ;;  %v1493_v26 = vpop.xlane.xlu0 %1492 }
 0x520   :  { %v1603_v4 = vadd.f32 %v1555_v21, %v3819_v8  ;;  %2491 = vlog2.f32 %v1493_v26 }
 0x521   :  { %v2482_v18 = vpop.eup %2481  ;;  %v1602_v54 = vadd.f32 %v1553_v24, %v3428_v0  ;;  %v3821_v0 = vld [vmem:[#allocation26_spill] sm:$0xff] }
 0x522   :  { %v2484_v56 = vpop.eup %2483  ;;  %v1891_v2 = vsub.f32 %v1603_v4, %v3538_v12  ;;  %v1551_v27 = vmul.f32 0.6931472, %v2482_v18  ;;  %v1507_v41 = vpop.xlane.xlu1 %1506 }
 0x523   :  { %v1890_v50 = vsub.f32 %v1602_v54, %v3532_v55  ;;  %v1549_v36 = vmul.f32 0.6931472, %v2484_v56  ;;  %2493 = vlog2.f32 %v1507_v41  ;;  %v1505_v53 = vpop.xlane.xlu0 %1504 }
 0x524   :  { %v1924_v58 = vsel %vm1908_vm1, %v1891_v2, %v3820_v45  ;;  %v1601_v29 = vadd.f32 %v1551_v27, %v3434_v34  ;;  %2495 = vlog2.f32 %v1505_v53 }
 0x525   :  { %v2486_v47 = vpop.eup %2485  ;;  %1956 = vst [vmem:[#allocation7 + $0x78] sm:$0xff] %v1924_v58  ;;  %v1923_v12 = vsel %vm1908_vm1, %v1890_v50, %v3821_v0  ;;  %v1600_v3 = vadd.f32 %v1549_v36, %v3436_v10  ;;  %v3823_v10 = vld [vmem:[#allocation28_spill] sm:$0xff] }
 0x526   :  { %v2488_v63 = vpop.eup %2487  ;;  %1955 = vst [vmem:[#allocation7 + $0x70] sm:$0xff] %v1923_v12  ;;  %v1889_v55 = vsub.f32 %v1601_v29, %v3534_v37  ;;  %v1563_v59 = vmul.f32 0.6931472, %v2486_v47  ;;  %v1503_v23 = vpop.xlane.xlu1 %1502  ;;  %v3826_v47 = vld [vmem:[#allocation36_spill] sm:$0xff] }
 0x527   :  { %v1888_v49 = vsub.f32 %v1600_v3, %v3530_v42  ;;  %v1561_v57 = vmul.f32 0.6931472, %v2488_v63  ;;  %2497 = vlog2.f32 %v1503_v23  ;;  %v1501_v34 = vpop.xlane.xlu0 %1500  ;;  %v3827_v3 = vld [vmem:[#allocation35_spill] sm:$0xff] }
 0x528   :  { %v1922_v14 = vsel %vm1908_vm1, %v1889_v55, %v3822_v19  ;;  %v1607_v21 = vadd.f32 %v1563_v59, %v3442_v22  ;;  %2499 = vlog2.f32 %v1501_v34  ;;  %v3824_v22 = vld [vmem:[#allocation31_spill] sm:$0xff] }
 0x529   :  { %v2490_v51 = vpop.eup %2489  ;;  %1954 = vst [vmem:[#allocation7 + $0x68] sm:$0xff] %v1922_v14  ;;  %v1921_v37 = vsel %vm1908_vm1, %v1888_v49, %v3823_v10  ;;  %v1606_v24 = vadd.f32 %v1561_v57, %v3444_v16  ;;  %v3825_v16 = vld [vmem:[#allocation30_spill] sm:$0xff] }
 0x52a   :  { %v2492_v26 = vpop.eup %2491  ;;  %1953 = vst [vmem:[#allocation7 + $0x60] sm:$0xff] %v1921_v37  ;;  %v1895_v42 = vsub.f32 %v1607_v21, %v3546_v62  ;;  %v1559_v8 = vmul.f32 0.6931472, %v2490_v51  ;;  %v1515_v4 = vpop.xlane.xlu1 %1514  ;;  %v3829_v21 = vld [vmem:[#allocation22_spill] sm:$0xff] }
 0x52b   :  { %v1894_v18 = vsub.f32 %v1606_v24, %v3540_v38  ;;  %v1557_v54 = vmul.f32 0.6931472, %v2492_v26  ;;  %v1513_v56 = vpop.xlane.xlu0 %1512  ;;  %2501 = vlog2.f32 %v1515_v4  ;;  %v3831_v4 = vld [vmem:[#allocation23_spill] sm:$0xff] }
 0x52c   :  { %v1928_v2 = vsel %vm1908_vm1, %v1895_v42, %v3824_v22  ;;  %v1605_v27 = vadd.f32 %v1559_v8, %v3450_v48  ;;  %2503 = vlog2.f32 %v1513_v56 }
 0x52d   :  { %v2494_v41 = vpop.eup %2493  ;;  %1960 = vst [vmem:[#allocation7 + $0x98] sm:$0xff] %v1928_v2  ;;  %v1927_v50 = vsel %vm1908_vm1, %v1894_v18, %v3825_v16  ;;  %v1604_v62 = vadd.f32 %v1557_v54, %v3452_v33 }
 0x52e   :  { %v2496_v36 = vpop.eup %2495  ;;  %1959 = vst [vmem:[#allocation7 + $0x90] sm:$0xff] %v1927_v50  ;;  %v1893_v38 = vsub.f32 %v1605_v27, %v3542_v13  ;;  %v1571_v53 = vmul.f32 0.6931472, %v2494_v41  ;;  %v1511_v45 = vpop.xlane.xlu1 %1510 }
 0x52f   :  { %v1892_v58 = vsub.f32 %v1604_v62, %v3536_v20  ;;  %v1569_v29 = vmul.f32 0.6931472, %v2496_v36  ;;  %2505 = vlog2.f32 %v1511_v45  ;;  %v1509_v48 = vpop.xlane.xlu0 %1508 }
 0x530   :  { %v1926_v0 = vsel %vm1908_vm1, %v1893_v38, %v3826_v47  ;;  %v1611_v12 = vadd.f32 %v1571_v53, %v3458_v30  ;;  %2507 = vlog2.f32 %v1509_v48  ;;  %v3828_v30 = vld [vmem:[#allocation24_spill] sm:$0xff] }
 0x531   :  { %v2498_v33 = vpop.eup %2497  ;;  %1958 = vst [vmem:[#allocation7 + $0x88] sm:$0xff] %v1926_v0  ;;  %v1925_v13 = vsel %vm1908_vm1, %v1892_v58, %v3827_v3  ;;  %v1610_v63 = vadd.f32 %v1569_v29, %v3460_v1 }
 0x532   :  { %v2500_v55 = vpop.eup %2499  ;;  %1957 = vst [vmem:[#allocation7 + $0x80] sm:$0xff] %v1925_v13  ;;  %v1899_v20 = vsub.f32 %v1611_v12, %v3552_v25  ;;  %v1567_v59 = vmul.f32 0.6931472, %v2498_v33  ;;  %v1523_v23 = vpop.xlane.xlu1 %1522 }
 0x533   :  { %v1898_v49 = vsub.f32 %v1610_v63, %v3548_v35  ;;  %v1565_v57 = vmul.f32 0.6931472, %v2500_v55  ;;  %v1521_v34 = vpop.xlane.xlu0 %1520  ;;  %2509 = vlog2.f32 %v1523_v23 }
 0x534   :  { %v1932_v19 = vsel %vm1908_vm1, %v1899_v20, %v3828_v30  ;;  %v1609_v14 = vadd.f32 %v1567_v59, %v3466_v11  ;;  %2511 = vlog2.f32 %v1521_v34  ;;  %v3830_v11 = vld [vmem:[#allocation25_spill] sm:$0xff] }
 0x535   :  { %1964 = vst [vmem:[#allocation7 + $0xb8] sm:$0xff] %v1932_v19  ;;  %v1931_v1 = vsel %vm1908_vm1, %v1898_v49, %v3829_v21  ;;  %v1608_v25 = vadd.f32 %v1565_v57, %v3468_v32  ;;  %v2502_v51 = vpop.eup %2501 }
 0x536   :  { %1963 = vst [vmem:[#allocation7 + $0xb0] sm:$0xff] %v1931_v1  ;;  %v1897_v35 = vsub.f32 %v1609_v14, %v3550_v40  ;;  %v1519_v10 = vpop.xlane.xlu1 %1518  ;;  %v2504_v37 = vpop.eup %2503  ;;  %v1579_v18 = vmul.f32 0.6931472, %v2502_v51 }
 0x537   :  { %v1896_v24 = vsub.f32 %v1608_v25, %v3544_v15  ;;  %2513 = vlog2.f32 %v1519_v10  ;;  %v1517_v26 = vpop.xlane.xlu0 %1516  ;;  %v1577_v40 = vmul.f32 0.6931472, %v2504_v37 }
 0x538   :  { %v1930_v42 = vsel %vm1908_vm1, %v1897_v35, %v3830_v11  ;;  %2515 = vlog2.f32 %v1517_v26  ;;  %v1615_v16 = vadd.f32 %v1579_v18, %v3474_v52 }
 0x539   :  { %v2506_v8 = vpop.eup %2505  ;;  %1962 = vst [vmem:[#allocation7 + $0xa8] sm:$0xff] %v1930_v42  ;;  %v1929_v32 = vsel %vm1908_vm1, %v1896_v24, %v3831_v4  ;;  %v1614_v38 = vadd.f32 %v1577_v40, %v3476_v60 }
 0x53a   :  { %v2508_v54 = vpop.eup %2507  ;;  %1961 = vst [vmem:[#allocation7 + $0xa0] sm:$0xff] %v1929_v32  ;;  %v1575_v56 = vmul.f32 0.6931472, %v2506_v8  ;;  %v1863_v22 = vpop.xlane.xlu1 %1862 }
 0x53b   :  { %v1573_v15 = vmul.f32 0.6931472, %v2508_v54  ;;  %v1861_v2 = vpop.xlane.xlu0 %1860 }
 0x53c   :  { %v1613_v27 = vadd.f32 %v1575_v56, %v3482_v28 }
 0x53d   :  { %v1612_v41 = vadd.f32 %v1573_v15, %v3484_v39  ;;  %v2510_v50 = vpop.eup %2509 }
 0x53e   :  { %v1901_v62 = vsub.f32 %v1613_v27, %v1863_v22  ;;  %v1867_v36 = vpop.xlane.xlu1 %1866  ;;  %v2512_v53 = vpop.eup %2511  ;;  %v1587_v28 = vmul.f32 0.6931472, %v2510_v50 }
 0x53f   :  { %v1900_v45 = vsub.f32 %v1612_v41, %v1861_v2  ;;  %v1903_v58 = vsub.f32 %v1615_v16, %v1867_v36  ;;  %v1865_v29 = vpop.xlane.xlu0 %1864  ;;  %v1585_v12 = vmul.f32 0.6931472, %v2512_v53 }
 0x540   :  { %v1934_v48 = vsel %vm1908_vm1, %v1901_v62, %v3168_v17  ;;  %v1902_v47 = vsub.f32 %v1614_v38, %v1865_v29  ;;  %v1619_v20 = vadd.f32 %v1587_v28, %v3490_v61 }
 0x541   :  { %v2514_v0 = vpop.eup %2513  ;;  %1966 = vst [vmem:[#allocation7 + $0xc8] sm:$0xff] %v1934_v48  ;;  %v1933_v52 = vsel %vm1908_vm1, %v1900_v45, %v3152_v7  ;;  %v1936_v60 = vsel %vm1908_vm1, %v1903_v58, %v3155_v9  ;;  %v1618_v23 = vadd.f32 %v1585_v12, %v3492_v31  ;;  %v3834_v31 = vld [vmem:[#allocation32_spill] sm:$0xff] }
 0x542   :  { %v2516_v39 = vpop.eup %2515  ;;  %v1583_v33 = vmul.f32 0.6931472, %v2514_v0  ;;  %1965 = vst [vmem:[#allocation7 + $0xc0] sm:$0xff] %v1933_v52  ;;  %1968 = vst [vmem:[#allocation7 + $0xd8] sm:$0xff] %v1936_v60  ;;  %v1935_v17 = vsel %vm1908_vm1, %v1902_v47, %v3149_v5  ;;  %v1871_v3 = vpop.xlane.xlu1 %1870 }
 0x543   :  { %v1581_v13 = vmul.f32 0.6931472, %v2516_v39  ;;  %1967 = vst [vmem:[#allocation7 + $0xd0] sm:$0xff] %v1935_v17  ;;  %v1869_v63 = vpop.xlane.xlu0 %1868 }
 0x544   :  { %v1617_v55 = vadd.f32 %v1583_v33, %v3498_v44  ;;  %v3832_v44 = vld [vmem:[#allocation33_spill] sm:$0xff] }
 0x545   :  { %v1616_v7 = vadd.f32 %v1581_v13, %v3500_v6  ;;  %v3833_v6 = vld [vmem:[#allocation34_spill] sm:$0xff] }
 0x546   :  { %v1905_v9 = vsub.f32 %v1617_v55, %v1871_v3  ;;  %v1875_v59 = vpop.xlane.xlu1 %1874 }
 0x547   :  { %v1904_v49 = vsub.f32 %v1616_v7, %v1869_v63  ;;  %v1907_v57 = vsub.f32 %v1619_v20, %v1875_v59  ;;  %v1873_v34 = vpop.xlane.xlu0 %1872 }
 0x548   :  { %v1938_v5 = vsel %vm1908_vm1, %v1905_v9, %v3218_v46  ;;  %v1906_v30 = vsub.f32 %v1618_v23, %v1873_v34 }
 0x549   :  { %1970 = vst [vmem:[#allocation7 + $0xe8] sm:$0xff] %v1938_v5  ;;  %v1937_v61 = vsel %vm1908_vm1, %v1904_v49, %v3832_v44  ;;  %v1940_v19 = vsel %vm1908_vm1, %v1907_v57, %v3833_v6 }
 0x54a   :  { %1969 = vst [vmem:[#allocation7 + $0xe0] sm:$0xff] %v1937_v61  ;;  %1972 = vst [vmem:[#allocation7 + $0xf8] sm:$0xff] %v1940_v19  ;;  %v1939_v14 = vsel %vm1908_vm1, %v1906_v30, %v3834_v31 }
 0x54b   :  { %1971 = vst [vmem:[#allocation7 + $0xf0] sm:$0xff] %v1939_v14 }
 0x54c   :  { %2572 = shalt.err (!%p2569_p6)
}
 0x54d   :  { %s2573_s28 = scalar_lea.hbm %s3729_s10, 4096 }
 0x54e   :  { %p2574_p7 = scmp.ne.s32.totalorder %s3729_s10, %s2573_s28  ;;  %p2577_p8 = scmp.lt.u32.totalorder %s2573_s28, %s3729_s10 }
 0x550   :  { %p2579_p9 = pnand %p2577_p8, %p2574_p7 }
 0x552   :  { %2582 = shalt.err (!%p2579_p9)
}
 0x553   :  { %s2595_s13 = smov 128   ;;  %s2596_s15 = smov 8  }
 0x554   :  { %1984 = dma.vmem_to_hbm [thread:$0]  %s1979_s23, 4096, %s3729_s10, [#allocation4], %s2595_s13, %s2595_s13, %s2596_s15  }
 0x555   :  { %2587 = dma.done.wait [#allocation4], 4096  }
 0x556   :  { %2588 = vsyncadd [#allocation4], 4294963200 }
 0x557   :  { %1988 = vsyncpa [#allocation3], 1 }
 0x558   :  { %1989 = vsyncpa [#allocation6], 1 }
 0x559   :  { %1990 = vsyncpa [#allocation4], 1 }

</bundles_post_ra>
